<compile_context>
chip_gen: v7x
topology: tpu7x:2x2x1
jax: 0.10.0
libtpu: 0.0.40
codegen_flags: <defaults>
</compile_context>

<pallas_src>
import jax
import jax.numpy as jnp
from jax.experimental import pallas as pl
from jax.experimental.pallas import tpu as pltpu


def _lstm_chunk_kernel(x_ref, wih_ref, whh_ref, b_ref, wfc_ref, bfc_ref,
                       y_ref, h_ref, c_ref, xp_ref, hs_ref):
    """One (batch-chunk, time-chunk) grid step: LSTM recurrence + fused fc."""
    Tc, Bc, I = x_ref.shape
    Hp = whh_ref.shape[0]              # lane-padded hidden size (multiple of 128)
    Op = y_ref.shape[-1]               # lane-padded output size (multiple of 128)
    mxu_dtype = whh_ref.dtype

    # New batch chunk -> reset the recurrent carry.  The time axis is the last
    # (sequential) grid axis, so it restarts at 0 whenever the batch chunk advances.
    @pl.when(pl.program_id(1) == 0)
    def _():
        h_ref[...] = jnp.zeros_like(h_ref)
        c_ref[...] = jnp.zeros_like(c_ref)

    # Batched input projection for the whole chunk: one MXU call, bias hoisted.
    x2d = x_ref[...].reshape(Tc * Bc, I)
    xp = (jnp.dot(x2d, wih_ref[...], preferred_element_type=jnp.float32)
          + b_ref[...])                                        # (Tc*Bc, 4Hp) f32
    xp_ref[...] = xp.reshape(Tc, Bc, 4 * Hp)

    whh = whh_ref[...]                 # (Hp, 4Hp), VMEM-resident across steps
    h = h_ref[...]                     # (Bc, Hp) f32 carry
    c = c_ref[...]

    # Statically unrolled recurrence over the chunk (Tc is kept small by chunking).
    # TODO(synk): switch to lax.fori_loop(unroll=k) if Tc is ever pushed past ~32.
    # TODO(synk): at very small B hold W_hh stationary in the MXU weight registers
    #             (matmul_push_rhs / matmul_acc_lhs) if vmatmul pushes become binding.
    for t in range(Tc):
        gates = xp_ref[t] + jnp.dot(h.astype(mxu_dtype), whh,
                                    preferred_element_type=jnp.float32)  # (Bc, 4Hp)
        # Packed gate order [i, f, o, g]: one wide sigmoid + one tanh per step.
        sig = jax.nn.sigmoid(gates[:, :3 * Hp])
        i_g = sig[:, 0 * Hp:1 * Hp]
        f_g = sig[:, 1 * Hp:2 * Hp]
        o_g = sig[:, 2 * Hp:3 * Hp]
        g_g = jnp.tanh(gates[:, 3 * Hp:])
        c = f_g * c + i_g * g_g
        h = o_g * jnp.tanh(c)
        hs_ref[t] = h.astype(hs_ref.dtype)          # leading-dim, full (Bc, Hp) store

    h_ref[...] = h
    c_ref[...] = c

    # Fused fc over the whole chunk -> single MXU call; lane-dense (Op) store.
    h_all = hs_ref[...].reshape(Tc * Bc, Hp)
    y = (jnp.dot(h_all, wfc_ref[...], preferred_element_type=jnp.float32)
         + bfc_ref[...])                                       # (Tc*Bc, Op)
    y_ref[...] = y.reshape(Tc, Bc, Op).astype(y_ref.dtype)


_PACK_ORDER = (0, 1, 3, 2)     # PyTorch gate order i,f,g,o -> packed i,f,o,g


def _pack_gate_weight(w, H, Hp):
    """PyTorch gate weight (4H, D) -> transposed (D, 4*Hp), gates reordered to
    [i,f,o,g], each gate block zero-padded to Hp lanes."""
    D = w.shape[1]
    w4 = w.reshape(4, H, D)
    w4 = jnp.stack([w4[g] for g in _PACK_ORDER])
    w4p = jnp.zeros((4, Hp, D), w.dtype).at[:, :H, :].set(w4)
    return jnp.transpose(w4p, (2, 0, 1)).reshape(D, 4 * Hp)


def _pack_gate_bias(b, H, Hp):
    """(4H,) -> (1, 4*Hp), gates reordered to [i,f,o,g], zero-padded lanes."""
    b4 = b.reshape(4, H)
    b4 = jnp.stack([b4[g] for g in _PACK_ORDER])
    b4p = jnp.zeros((4, Hp), b.dtype).at[:, :H].set(b4)
    return b4p.reshape(1, 4 * Hp)


def time_series_lstm_forward(x, params, *, time_block=4, batch_block=None,
                             mxu_dtype=jnp.float32):
    """x: (B, T, input_size) batch-first, like the PyTorch module.

    mxu_dtype=jnp.bfloat16 casts the MXU operands (x, W_ih, W_hh, W_fc, h collector)
    to bf16 while keeping f32 accumulation and f32 gate/cell math.
    """
    B, T, I = x.shape
    H = params["w_hh"].shape[1]          # w_hh: (4H, H)
    O = params["w_fc"].shape[0]          # w_fc: (O, H)
    Hp = ((H + 127) // 128) * 128        # lane-tile aligned hidden size
    Op = ((O + 127) // 128) * 128        # lane-dense output width

    if batch_block is None:
        batch_block = B                  # v7x: pass batch_block = B // 2 (mult of 8)
    assert B % batch_block == 0
    assert batch_block == B or batch_block % 8 == 0, "batch blocks must be sublane-tiled"
    Tc = min(time_block, T)
    assert T % Tc == 0, "pad T to a multiple of time_block"
    # NOTE: for real workloads batch so B is a multiple of 8 (>=128 on v6e/v7x) to
    # fill MXU rows / sublanes; B=2 here is latency-bound by construction.

    f32 = jnp.float32
    # One-time weight packing (reorder + transpose + per-gate zero pad) — wrapper glue.
    wih_p = _pack_gate_weight(params["w_ih"], H, Hp).astype(mxu_dtype)        # (I, 4Hp)
    whh_p = jnp.zeros((Hp, 4 * Hp), f32).at[:H, :].set(
        _pack_gate_weight(params["w_hh"], H, Hp)).astype(mxu_dtype)           # (Hp, 4Hp)
    b_p = _pack_gate_bias(params["b_ih"] + params["b_hh"], H, Hp).astype(f32)  # (1, 4Hp)
    wfc_p = jnp.zeros((Hp, Op), f32).at[:H, :O].set(
        params["w_fc"].T).astype(mxu_dtype)                                   # (Hp, Op)
    bfc_p = jnp.zeros((1, Op), f32).at[0, :O].set(params["b_fc"])             # (1, Op)

    x_tm = jnp.transpose(x, (1, 0, 2)).astype(mxu_dtype)      # time-major (T, B, I)

    grid = (B // batch_block, T // Tc)

    # VMEM budget from buffer arithmetic (+headroom), per perf feedback.
    mxu_bytes = jnp.dtype(mxu_dtype).itemsize
    weights_b = (I * 4 * Hp + Hp * 4 * Hp + Hp * Op) * mxu_bytes + (4 * Hp + Op) * 4
    stream_b = 2 * (Tc * batch_block * I * mxu_bytes) + 2 * (Tc * batch_block * Op * 4)
    scratch_b = (2 * batch_block * Hp * 4 + Tc * batch_block * 4 * Hp * 4
                 + Tc * batch_block * Hp * mxu_bytes)
    vmem_limit = int(min(64 * 1024 * 1024,
                         2 * (weights_b + stream_b + scratch_b) + 8 * 1024 * 1024))

    y_tm = pl.pallas_call(
        _lstm_chunk_kernel,
        out_shape=jax.ShapeDtypeStruct((T, B, Op), f32),
        grid_spec=pltpu.PrefetchScalarGridSpec(
            num_scalar_prefetch=0,
            grid=grid,
            in_specs=[
                # x streamed per (batch, time) chunk, time-major.
                pl.BlockSpec((Tc, batch_block, I), lambda b, t: (t, b, 0)),
                # Loop-invariant weights/biases: whole-array VMEM resident.
                pl.BlockSpec(memory_space=pltpu.MemorySpace.VMEM),   # W_ih packed
                pl.BlockSpec(memory_space=pltpu.MemorySpace.VMEM),   # W_hh packed
                pl.BlockSpec(memory_space=pltpu.MemorySpace.VMEM),   # gate bias
                pl.BlockSpec(memory_space=pltpu.MemorySpace.VMEM),   # W_fc packed
                pl.BlockSpec(memory_space=pltpu.MemorySpace.VMEM),   # fc bias
            ],
            out_specs=pl.BlockSpec((Tc, batch_block, Op), lambda b, t: (t, b, 0)),
            scratch_shapes=[
                pltpu.VMEM((batch_block, Hp), f32),             # h carry across chunks
                pltpu.VMEM((batch_block, Hp), f32),             # c carry across chunks
                pltpu.VMEM((Tc, batch_block, 4 * Hp), f32),     # pre-projected gates
                pltpu.VMEM((Tc, batch_block, Hp), mxu_dtype),   # h collector for the fc
            ]),
        compiler_params=pltpu.CompilerParams(
            dimension_semantics=("parallel", "arbitrary"),
            vmem_limit_bytes=vmem_limit),
    )(x_tm, wih_p, whh_p, b_p, wfc_p, bfc_p)

    # Cheap wrapper-side reorder/slice: time-major lane-padded -> batch-first (B, T, O).
    return jnp.transpose(y_tm[..., :O], (1, 0, 2)).astype(x.dtype)


def _reference_forward(x, params):
    """Pure-JAX reference (PyTorch LSTM semantics, gate order i,f,g,o)."""
    B, T, I = x.shape
    H = params["w_hh"].shape[1]

    def step(carry, x_t):
        h, c = carry
        gates = (x_t @ params["w_ih"].T + params["b_ih"]
                 + h @ params["w_hh"].T + params["b_hh"])
        i_g = jax.nn.sigmoid(gates[:, 0 * H:1 * H])
        f_g = jax.nn.sigmoid(gates[:, 1 * H:2 * H])
        g_g = jnp.tanh(gates[:, 2 * H:3 * H])
        o_g = jax.nn.sigmoid(gates[:, 3 * H:4 * H])
        c_new = f_g * c + i_g * g_g
        h_new = o_g * jnp.tanh(c_new)
        return (h_new, c_new), h_new

    h0 = jnp.zeros((B, H), jnp.float32)
    c0 = jnp.zeros((B, H), jnp.float32)
    _, hs = jax.lax.scan(step, (h0, c0), jnp.transpose(x, (1, 0, 2)))
    hs = jnp.transpose(hs, (1, 0, 2))                 # (B, T, H)
    return hs @ params["w_fc"].T + params["b_fc"]


def init_params(key, input_size, hidden_size, output_size):
    """Deterministic init mirroring nn.LSTM / nn.Linear parameter shapes."""
    k = 1.0 / jnp.sqrt(jnp.float32(hidden_size))
    keys = jax.random.split(key, 6)
    u = lambda kk, shape: jax.random.uniform(kk, shape, jnp.float32, -k, k)
    return {
        "w_ih": u(keys[0], (4 * hidden_size, input_size)),
        "w_hh": u(keys[1], (4 * hidden_size, hidden_size)),
        "b_ih": u(keys[2], (4 * hidden_size,)),
        "b_hh": u(keys[3], (4 * hidden_size,)),
        "w_fc": u(keys[4], (output_size, hidden_size)),
        "b_fc": u(keys[5], (output_size,)),
    }


if __name__ == "__main__":
    B, T, INPUT, HIDDEN, OUTPUT = 2, 8, 16, 32, 16

    key = jax.random.PRNGKey(0)
    kx, kp = jax.random.split(key)
    x = jax.random.normal(kx, (B, T, INPUT), jnp.float32)
    params = init_params(kp, INPUT, HIDDEN, OUTPUT)

    y_ref = _reference_forward(x, params)

    # Exact path (f32 MXU operands): matches nn.LSTM semantics tightly.
    y = jax.block_until_ready(time_series_lstm_forward(x, params, time_block=4))
    assert y.shape == (B, T, OUTPUT)
    assert jnp.allclose(y, y_ref, atol=1e-4, rtol=1e-4), (
        float(jnp.max(jnp.abs(y - y_ref))))

    # bf16-MXU path (f32 accumulation + f32 gate/cell math): looser tolerance.
    y_bf = jax.block_until_ready(
        time_series_lstm_forward(x, params, time_block=4, mxu_dtype=jnp.bfloat16))
    assert jnp.allclose(y_bf, y_ref, atol=5e-2, rtol=5e-2), (
        float(jnp.max(jnp.abs(y_bf - y_ref))))

    print("KERNEL_OK")
</pallas_src>

<mosaic_0001>
module attributes {stable_mosaic.version = 11 : i64} {
  func.func @_lstm_chunk_kernel(%arg0: i32, %arg1: i32, %arg2: memref<4x2x16xf32, #tpu.memory_space<vmem>>, %arg3: memref<16x512xf32, #tpu.memory_space<vmem>>, %arg4: memref<128x512xf32, #tpu.memory_space<vmem>>, %arg5: memref<1x512xf32, #tpu.memory_space<vmem>>, %arg6: memref<128x128xf32, #tpu.memory_space<vmem>>, %arg7: memref<1x128xf32, #tpu.memory_space<vmem>>, %arg8: memref<4x2x128xf32, #tpu.memory_space<vmem>>, %arg9: memref<2x128xf32, #tpu.memory_space<vmem>>, %arg10: memref<2x128xf32, #tpu.memory_space<vmem>>, %arg11: memref<4x2x512xf32, #tpu.memory_space<vmem>>, %arg12: memref<4x2x128xf32, #tpu.memory_space<vmem>>) attributes {dimension_semantics = [#tpu.dimension_semantics<parallel>, #tpu.dimension_semantics<arbitrary>], iteration_bounds = array<i64: 1, 2>, scalar_prefetch = 0 : i64, scratch_operands = 4 : i64, tpu.core_type = #tpu.core_type<tc>, window_params = [{transform_indices = @transform_0, window_bounds = array<i64: 4, 2, 16>}, {pipeline_mode = #tpu.pipeline_mode<synchronous>, transform_indices = @transform_1, window_bounds = array<i64: 16, 512>}, {pipeline_mode = #tpu.pipeline_mode<synchronous>, transform_indices = @transform_2, window_bounds = array<i64: 128, 512>}, {pipeline_mode = #tpu.pipeline_mode<synchronous>, transform_indices = @transform_3, window_bounds = array<i64: 1, 512>}, {pipeline_mode = #tpu.pipeline_mode<synchronous>, transform_indices = @transform_4, window_bounds = array<i64: 128, 128>}, {pipeline_mode = #tpu.pipeline_mode<synchronous>, transform_indices = @transform_5, window_bounds = array<i64: 1, 128>}, {transform_indices = @transform_6, window_bounds = array<i64: 4, 2, 128>}]} {
    %c0_i32 = arith.constant 0 : i32
    %0 = arith.cmpi eq, %arg1, %c0_i32 : i32
    %1 = arith.extui %0 : i1 to i32
    %c0_i32_0 = arith.constant 0 : i32
    %2 = arith.cmpi ne, %1, %c0_i32_0 : i32
    scf.if %2 {
      %cst_60 = arith.constant 0.000000e+00 : f32
      %118 = vector.broadcast %cst_60 : f32 to vector<2x128xf32>
      %c0_61 = arith.constant 0 : index
      %c0_62 = arith.constant 0 : index
      %119 = vector.load %arg9[%c0_61, %c0_62] : memref<2x128xf32, #tpu.memory_space<vmem>>, vector<2x128xf32>
      tpu.vector_store %arg9[%c0_61, %c0_62], %118 {strides = array<i32>} : memref<2x128xf32, #tpu.memory_space<vmem>>, vector<2x128xf32>,
      %cst_63 = arith.constant 0.000000e+00 : f32
      %120 = vector.broadcast %cst_63 : f32 to vector<2x128xf32>
      %c0_64 = arith.constant 0 : index
      %c0_65 = arith.constant 0 : index
      %121 = vector.load %arg10[%c0_64, %c0_65] : memref<2x128xf32, #tpu.memory_space<vmem>>, vector<2x128xf32>
      tpu.vector_store %arg10[%c0_64, %c0_65], %120 {strides = array<i32>} : memref<2x128xf32, #tpu.memory_space<vmem>>, vector<2x128xf32>,
    } else {
    }
    %c0 = arith.constant 0 : index
    %c0_1 = arith.constant 0 : index
    %c0_2 = arith.constant 0 : index
    %3 = vector.load %arg2[%c0, %c0_1, %c0_2] : memref<4x2x16xf32, #tpu.memory_space<vmem>>, vector<4x2x16xf32>
    %4 = vector.shape_cast %3 : vector<4x2x16xf32> to vector<8x16xf32>
    %c0_3 = arith.constant 0 : index
    %c0_4 = arith.constant 0 : index
    %5 = vector.load %arg3[%c0_3, %c0_4] : memref<16x512xf32, #tpu.memory_space<vmem>>, vector<16x512xf32>
    %cst = arith.constant dense<0.000000e+00> : vector<8x512xf32>
    %6 = tpu.matmul %4, %5, %cst {dimension_numbers = #tpu.dot_dimension_numbers<[1], [0], [0], [1], [0, 0, 1, 1], [], []>} : vector<8x16xf32>, vector<16x512xf32>, vector<8x512xf32> -> vector<8x512xf32>
    %c0_5 = arith.constant 0 : index
    %c0_6 = arith.constant 0 : index
    %7 = vector.load %arg5[%c0_5, %c0_6] : memref<1x512xf32, #tpu.memory_space<vmem>>, vector<1x512xf32>
    %8 = vector.broadcast %7 : vector<1x512xf32> to vector<8x512xf32>
    %9 = arith.addf %6, %8 : vector<8x512xf32>
    %10 = vector.shape_cast %9 : vector<8x512xf32> to vector<4x2x512xf32>
    %c0_7 = arith.constant 0 : index
    %c0_8 = arith.constant 0 : index
    %c0_9 = arith.constant 0 : index
    %11 = vector.load %arg11[%c0_7, %c0_8, %c0_9] : memref<4x2x512xf32, #tpu.memory_space<vmem>>, vector<4x2x512xf32>
    tpu.vector_store %arg11[%c0_7, %c0_8, %c0_9], %10 {strides = array<i32>} : memref<4x2x512xf32, #tpu.memory_space<vmem>>, vector<4x2x512xf32>,
    %c0_10 = arith.constant 0 : index
    %c0_11 = arith.constant 0 : index
    %12 = vector.load %arg4[%c0_10, %c0_11] : memref<128x512xf32, #tpu.memory_space<vmem>>, vector<128x512xf32>
    %c0_12 = arith.constant 0 : index
    %c0_13 = arith.constant 0 : index
    %13 = vector.load %arg9[%c0_12, %c0_13] : memref<2x128xf32, #tpu.memory_space<vmem>>, vector<2x128xf32>
    %c0_14 = arith.constant 0 : index
    %c0_15 = arith.constant 0 : index
    %14 = vector.load %arg10[%c0_14, %c0_15] : memref<2x128xf32, #tpu.memory_space<vmem>>, vector<2x128xf32>
    %c0_16 = arith.constant 0 : index
    %c0_17 = arith.constant 0 : index
    %c0_18 = arith.constant 0 : index
    %15 = vector.load %arg11[%c0_16, %c0_17, %c0_18] : memref<4x2x512xf32, #tpu.memory_space<vmem>>, vector<1x2x512xf32>
    %16 = vector.shape_cast %15 : vector<1x2x512xf32> to vector<2x512xf32>
    %cst_19 = arith.constant dense<0.000000e+00> : vector<2x512xf32>
    %17 = tpu.matmul %13, %12, %cst_19 {dimension_numbers = #tpu.dot_dimension_numbers<[1], [0], [0], [1], [0, 0, 1, 1], [], []>} : vector<2x128xf32>, vector<128x512xf32>, vector<2x512xf32> -> vector<2x512xf32>
    %18 = arith.addf %16, %17 : vector<2x512xf32>
    %19 = vector.extract_strided_slice %18 {offsets = [0, 0], sizes = [2, 384], strides = [1, 1]} : vector<2x512xf32> to vector<2x384xf32>
    %20 = arith.negf %19 : vector<2x384xf32>
    %21 = math.exp %20 : vector<2x384xf32>
    %cst_20 = arith.constant 1.000000e+00 : f32
    %22 = vector.broadcast %cst_20 : f32 to vector<2x384xf32>
    %23 = arith.addf %22, %21 : vector<2x384xf32>
    %24 = arith.divf %22, %23 : vector<2x384xf32>
    %25 = vector.extract_strided_slice %24 {offsets = [0, 0], sizes = [2, 128], strides = [1, 1]} : vector<2x384xf32> to vector<2x128xf32>
    %26 = vector.extract_strided_slice %24 {offsets = [0, 128], sizes = [2, 128], strides = [1, 1]} : vector<2x384xf32> to vector<2x128xf32>
    %27 = vector.extract_strided_slice %24 {offsets = [0, 256], sizes = [2, 128], strides = [1, 1]} : vector<2x384xf32> to vector<2x128xf32>
    %28 = vector.extract_strided_slice %18 {offsets = [0, 384], sizes = [2, 128], strides = [1, 1]} : vector<2x512xf32> to vector<2x128xf32>
    %29 = math.tanh %28 : vector<2x128xf32>
    %30 = arith.mulf %26, %14 : vector<2x128xf32>
    %31 = arith.mulf %25, %29 : vector<2x128xf32>
    %32 = arith.addf %30, %31 : vector<2x128xf32>
    %33 = math.tanh %32 : vector<2x128xf32>
    %34 = arith.mulf %27, %33 : vector<2x128xf32>
    %c0_21 = arith.constant 0 : index
    %c0_22 = arith.constant 0 : index
    %c0_23 = arith.constant 0 : index
    %35 = vector.load %arg12[%c0_21, %c0_22, %c0_23] : memref<4x2x128xf32, #tpu.memory_space<vmem>>, vector<1x2x128xf32>
    %36 = vector.shape_cast %35 : vector<1x2x128xf32> to vector<2x128xf32>
    %37 = vector.shape_cast %34 : vector<2x128xf32> to vector<1x2x128xf32>
    tpu.vector_store %arg12[%c0_21, %c0_22, %c0_23], %37 {strides = array<i32>} : memref<4x2x128xf32, #tpu.memory_space<vmem>>, vector<1x2x128xf32>,
    %c1 = arith.constant 1 : index
    %c0_24 = arith.constant 0 : index
    %c0_25 = arith.constant 0 : index
    %38 = vector.load %arg11[%c1, %c0_24, %c0_25] : memref<4x2x512xf32, #tpu.memory_space<vmem>>, vector<1x2x512xf32>
    %39 = vector.shape_cast %38 : vector<1x2x512xf32> to vector<2x512xf32>
    %cst_26 = arith.constant dense<0.000000e+00> : vector<2x512xf32>
    %40 = tpu.matmul %34, %12, %cst_26 {dimension_numbers = #tpu.dot_dimension_numbers<[1], [0], [0], [1], [0, 0, 1, 1], [], []>} : vector<2x128xf32>, vector<128x512xf32>, vector<2x512xf32> -> vector<2x512xf32>
    %41 = arith.addf %39, %40 : vector<2x512xf32>
    %42 = vector.extract_strided_slice %41 {offsets = [0, 0], sizes = [2, 384], strides = [1, 1]} : vector<2x512xf32> to vector<2x384xf32>
    %43 = arith.negf %42 : vector<2x384xf32>
    %44 = math.exp %43 : vector<2x384xf32>
    %cst_27 = arith.constant 1.000000e+00 : f32
    %45 = vector.broadcast %cst_27 : f32 to vector<2x384xf32>
    %46 = arith.addf %45, %44 : vector<2x384xf32>
    %47 = arith.divf %45, %46 : vector<2x384xf32>
    %48 = vector.extract_strided_slice %47 {offsets = [0, 0], sizes = [2, 128], strides = [1, 1]} : vector<2x384xf32> to vector<2x128xf32>
    %49 = vector.extract_strided_slice %47 {offsets = [0, 128], sizes = [2, 128], strides = [1, 1]} : vector<2x384xf32> to vector<2x128xf32>
    %50 = vector.extract_strided_slice %47 {offsets = [0, 256], sizes = [2, 128], strides = [1, 1]} : vector<2x384xf32> to vector<2x128xf32>
    %51 = vector.extract_strided_slice %41 {offsets = [0, 384], sizes = [2, 128], strides = [1, 1]} : vector<2x512xf32> to vector<2x128xf32>
    %52 = math.tanh %51 : vector<2x128xf32>
    %53 = arith.mulf %49, %32 : vector<2x128xf32>
    %54 = arith.mulf %48, %52 : vector<2x128xf32>
    %55 = arith.addf %53, %54 : vector<2x128xf32>
    %56 = math.tanh %55 : vector<2x128xf32>
    %57 = arith.mulf %50, %56 : vector<2x128xf32>
    %c1_28 = arith.constant 1 : index
    %c0_29 = arith.constant 0 : index
    %c0_30 = arith.constant 0 : index
    %58 = vector.load %arg12[%c1_28, %c0_29, %c0_30] : memref<4x2x128xf32, #tpu.memory_space<vmem>>, vector<1x2x128xf32>
    %59 = vector.shape_cast %58 : vector<1x2x128xf32> to vector<2x128xf32>
    %60 = vector.shape_cast %57 : vector<2x128xf32> to vector<1x2x128xf32>
    tpu.vector_store %arg12[%c1_28, %c0_29, %c0_30], %60 {strides = array<i32>} : memref<4x2x128xf32, #tpu.memory_space<vmem>>, vector<1x2x128xf32>,
    %c2 = arith.constant 2 : index
    %c0_31 = arith.constant 0 : index
    %c0_32 = arith.constant 0 : index
    %61 = vector.load %arg11[%c2, %c0_31, %c0_32] : memref<4x2x512xf32, #tpu.memory_space<vmem>>, vector<1x2x512xf32>
    %62 = vector.shape_cast %61 : vector<1x2x512xf32> to vector<2x512xf32>
    %cst_33 = arith.constant dense<0.000000e+00> : vector<2x512xf32>
    %63 = tpu.matmul %57, %12, %cst_33 {dimension_numbers = #tpu.dot_dimension_numbers<[1], [0], [0], [1], [0, 0, 1, 1], [], []>} : vector<2x128xf32>, vector<128x512xf32>, vector<2x512xf32> -> vector<2x512xf32>
    %64 = arith.addf %62, %63 : vector<2x512xf32>
    %65 = vector.extract_strided_slice %64 {offsets = [0, 0], sizes = [2, 384], strides = [1, 1]} : vector<2x512xf32> to vector<2x384xf32>
    %66 = arith.negf %65 : vector<2x384xf32>
    %67 = math.exp %66 : vector<2x384xf32>
    %cst_34 = arith.constant 1.000000e+00 : f32
    %68 = vector.broadcast %cst_34 : f32 to vector<2x384xf32>
    %69 = arith.addf %68, %67 : vector<2x384xf32>
    %70 = arith.divf %68, %69 : vector<2x384xf32>
    %71 = vector.extract_strided_slice %70 {offsets = [0, 0], sizes = [2, 128], strides = [1, 1]} : vector<2x384xf32> to vector<2x128xf32>
    %72 = vector.extract_strided_slice %70 {offsets = [0, 128], sizes = [2, 128], strides = [1, 1]} : vector<2x384xf32> to vector<2x128xf32>
    %73 = vector.extract_strided_slice %70 {offsets = [0, 256], sizes = [2, 128], strides = [1, 1]} : vector<2x384xf32> to vector<2x128xf32>
    %74 = vector.extract_strided_slice %64 {offsets = [0, 384], sizes = [2, 128], strides = [1, 1]} : vector<2x512xf32> to vector<2x128xf32>
    %75 = math.tanh %74 : vector<2x128xf32>
    %76 = arith.mulf %72, %55 : vector<2x128xf32>
    %77 = arith.mulf %71, %75 : vector<2x128xf32>
    %78 = arith.addf %76, %77 : vector<2x128xf32>
    %79 = math.tanh %78 : vector<2x128xf32>
    %80 = arith.mulf %73, %79 : vector<2x128xf32>
    %c2_35 = arith.constant 2 : index
    %c0_36 = arith.constant 0 : index
    %c0_37 = arith.constant 0 : index
    %81 = vector.load %arg12[%c2_35, %c0_36, %c0_37] : memref<4x2x128xf32, #tpu.memory_space<vmem>>, vector<1x2x128xf32>
    %82 = vector.shape_cast %81 : vector<1x2x128xf32> to vector<2x128xf32>
    %83 = vector.shape_cast %80 : vector<2x128xf32> to vector<1x2x128xf32>
    tpu.vector_store %arg12[%c2_35, %c0_36, %c0_37], %83 {strides = array<i32>} : memref<4x2x128xf32, #tpu.memory_space<vmem>>, vector<1x2x128xf32>,
    %c3 = arith.constant 3 : index
    %c0_38 = arith.constant 0 : index
    %c0_39 = arith.constant 0 : index
    %84 = vector.load %arg11[%c3, %c0_38, %c0_39] : memref<4x2x512xf32, #tpu.memory_space<vmem>>, vector<1x2x512xf32>
    %85 = vector.shape_cast %84 : vector<1x2x512xf32> to vector<2x512xf32>
    %cst_40 = arith.constant dense<0.000000e+00> : vector<2x512xf32>
    %86 = tpu.matmul %80, %12, %cst_40 {dimension_numbers = #tpu.dot_dimension_numbers<[1], [0], [0], [1], [0, 0, 1, 1], [], []>} : vector<2x128xf32>, vector<128x512xf32>, vector<2x512xf32> -> vector<2x512xf32>
    %87 = arith.addf %85, %86 : vector<2x512xf32>
    %88 = vector.extract_strided_slice %87 {offsets = [0, 0], sizes = [2, 384], strides = [1, 1]} : vector<2x512xf32> to vector<2x384xf32>
    %89 = arith.negf %88 : vector<2x384xf32>
    %90 = math.exp %89 : vector<2x384xf32>
    %cst_41 = arith.constant 1.000000e+00 : f32
    %91 = vector.broadcast %cst_41 : f32 to vector<2x384xf32>
    %92 = arith.addf %91, %90 : vector<2x384xf32>
    %93 = arith.divf %91, %92 : vector<2x384xf32>
    %94 = vector.extract_strided_slice %93 {offsets = [0, 0], sizes = [2, 128], strides = [1, 1]} : vector<2x384xf32> to vector<2x128xf32>
    %95 = vector.extract_strided_slice %93 {offsets = [0, 128], sizes = [2, 128], strides = [1, 1]} : vector<2x384xf32> to vector<2x128xf32>
    %96 = vector.extract_strided_slice %93 {offsets = [0, 256], sizes = [2, 128], strides = [1, 1]} : vector<2x384xf32> to vector<2x128xf32>
    %97 = vector.extract_strided_slice %87 {offsets = [0, 384], sizes = [2, 128], strides = [1, 1]} : vector<2x512xf32> to vector<2x128xf32>
    %98 = math.tanh %97 : vector<2x128xf32>
    %99 = arith.mulf %95, %78 : vector<2x128xf32>
    %100 = arith.mulf %94, %98 : vector<2x128xf32>
    %101 = arith.addf %99, %100 : vector<2x128xf32>
    %102 = math.tanh %101 : vector<2x128xf32>
    %103 = arith.mulf %96, %102 : vector<2x128xf32>
    %c3_42 = arith.constant 3 : index
    %c0_43 = arith.constant 0 : index
    %c0_44 = arith.constant 0 : index
    %104 = vector.load %arg12[%c3_42, %c0_43, %c0_44] : memref<4x2x128xf32, #tpu.memory_space<vmem>>, vector<1x2x128xf32>
    %105 = vector.shape_cast %104 : vector<1x2x128xf32> to vector<2x128xf32>
    %106 = vector.shape_cast %103 : vector<2x128xf32> to vector<1x2x128xf32>
    tpu.vector_store %arg12[%c3_42, %c0_43, %c0_44], %106 {strides = array<i32>} : memref<4x2x128xf32, #tpu.memory_space<vmem>>, vector<1x2x128xf32>,
    %c0_45 = arith.constant 0 : index
    %c0_46 = arith.constant 0 : index
    %107 = vector.load %arg9[%c0_45, %c0_46] : memref<2x128xf32, #tpu.memory_space<vmem>>, vector<2x128xf32>
    tpu.vector_store %arg9[%c0_45, %c0_46], %103 {strides = array<i32>} : memref<2x128xf32, #tpu.memory_space<vmem>>, vector<2x128xf32>,
    %c0_47 = arith.constant 0 : index
    %c0_48 = arith.constant 0 : index
    %108 = vector.load %arg10[%c0_47, %c0_48] : memref<2x128xf32, #tpu.memory_space<vmem>>, vector<2x128xf32>
    tpu.vector_store %arg10[%c0_47, %c0_48], %101 {strides = array<i32>} : memref<2x128xf32, #tpu.memory_space<vmem>>, vector<2x128xf32>,
    %c0_49 = arith.constant 0 : index
    %c0_50 = arith.constant 0 : index
    %c0_51 = arith.constant 0 : index
    %109 = vector.load %arg12[%c0_49, %c0_50, %c0_51] : memref<4x2x128xf32, #tpu.memory_space<vmem>>, vector<4x2x128xf32>
    %110 = vector.shape_cast %109 : vector<4x2x128xf32> to vector<8x128xf32>
    %c0_52 = arith.constant 0 : index
    %c0_53 = arith.constant 0 : index
    %111 = vector.load %arg6[%c0_52, %c0_53] : memref<128x128xf32, #tpu.memory_space<vmem>>, vector<128x128xf32>
    %cst_54 = arith.constant dense<0.000000e+00> : vector<8x128xf32>
    %112 = tpu.matmul %110, %111, %cst_54 {dimension_numbers = #tpu.dot_dimension_numbers<[1], [0], [0], [1], [0, 0, 1, 1], [], []>} : vector<8x128xf32>, vector<128x128xf32>, vector<8x128xf32> -> vector<8x128xf32>
    %c0_55 = arith.constant 0 : index
    %c0_56 = arith.constant 0 : index
    %113 = vector.load %arg7[%c0_55, %c0_56] : memref<1x128xf32, #tpu.memory_space<vmem>>, vector<1x128xf32>
    %114 = vector.broadcast %113 : vector<1x128xf32> to vector<8x128xf32>
    %115 = arith.addf %112, %114 : vector<8x128xf32>
    %116 = vector.shape_cast %115 : vector<8x128xf32> to vector<4x2x128xf32>
    %c0_57 = arith.constant 0 : index
    %c0_58 = arith.constant 0 : index
    %c0_59 = arith.constant 0 : index
    %117 = vector.load %arg8[%c0_57, %c0_58, %c0_59] : memref<4x2x128xf32, #tpu.memory_space<vmem>>, vector<4x2x128xf32>
    tpu.vector_store %arg8[%c0_57, %c0_58, %c0_59], %116 {strides = array<i32>} : memref<4x2x128xf32, #tpu.memory_space<vmem>>, vector<4x2x128xf32>,
    return
  }
  func.func @transform_0(%arg0: i32, %arg1: i32) -> (i32, i32, i32) {
    %c0_i32 = arith.constant 0 : i32
    %c0_i32_0 = arith.constant 0 : i32
    return %arg1, %arg0, %c0_i32 : i32, i32, i32
  }
  func.func @transform_1(%arg0: i32, %arg1: i32) -> (i32, i32) {
    %c0_i32 = arith.constant 0 : i32
    %c0_i32_0 = arith.constant 0 : i32
    %c0_i32_1 = arith.constant 0 : i32
    return %c0_i32, %c0_i32_0 : i32, i32
  }
  func.func @transform_2(%arg0: i32, %arg1: i32) -> (i32, i32) {
    %c0_i32 = arith.constant 0 : i32
    %c0_i32_0 = arith.constant 0 : i32
    %c0_i32_1 = arith.constant 0 : i32
    return %c0_i32, %c0_i32_0 : i32, i32
  }
  func.func @transform_3(%arg0: i32, %arg1: i32) -> (i32, i32) {
    %c0_i32 = arith.constant 0 : i32
    %c0_i32_0 = arith.constant 0 : i32
    %c0_i32_1 = arith.constant 0 : i32
    return %c0_i32, %c0_i32_0 : i32, i32
  }
  func.func @transform_4(%arg0: i32, %arg1: i32) -> (i32, i32) {
    %c0_i32 = arith.constant 0 : i32
    %c0_i32_0 = arith.constant 0 : i32
    %c0_i32_1 = arith.constant 0 : i32
    return %c0_i32, %c0_i32_0 : i32, i32
  }
  func.func @transform_5(%arg0: i32, %arg1: i32) -> (i32, i32) {
    %c0_i32 = arith.constant 0 : i32
    %c0_i32_0 = arith.constant 0 : i32
    %c0_i32_1 = arith.constant 0 : i32
    return %c0_i32, %c0_i32_0 : i32, i32
  }
  func.func @transform_6(%arg0: i32, %arg1: i32) -> (i32, i32, i32) {
    %c0_i32 = arith.constant 0 : i32
    %c0_i32_0 = arith.constant 0 : i32
    return %arg1, %arg0, %c0_i32 : i32, i32, i32
  }
}

</mosaic_0001>

<bundles_post_ra>
// kernel: tpu_custom_call.1
= control target key start
LH: loop header
LB: loop body
LE: loop exit
PB: predicated region body
PF: predicated region fallthrough
CT: control target
= control target key end

     0   :  { %s3020_s0 = inlined_call_operand.hbm [shape: f32[8,2,16], index: 0, kind: input, shape index: {}]   ;;  %s3021_s1 = inlined_call_operand.hbm [shape: f32[16,512], index: 1, kind: input, shape index: {}]   ;;  %s3022_s2 = inlined_call_operand.hbm [shape: f32[128,512], index: 2, kind: input, shape index: {}]   ;;  %s3023_s3 = inlined_call_operand.vmem [shape: f32[1,512], index: 3, kind: input, shape index: {}]   ;;  %s3024_s4 = inlined_call_operand.hbm [shape: f32[128,128], index: 4, kind: input, shape index: {}]   ;;  %s3025_s5 = inlined_call_operand.vmem [shape: f32[1,128], index: 5, kind: input, shape index: {}]   ;;  %s3026_s6 = inlined_call_operand.hbm [shape: f32[8,2,128], index: 6, kind: output, shape index: {}]  }
   0x1   :  { %3034 = sst [smem:[#allocation21_spill]] %s3026_s6 }
   0x2   :  { %11 = vsyncpa [#allocation7], 0 }
   0x3   :  { %13 = vsyncpa [#allocation7 + $0x1], 0 }
   0x4   :  { %14 = vsyncpa [#allocation10], 0 }
   0x5   :  { %15 = vsyncpa [#allocation13], 0 }
   0x6   :  { %16 = vsyncpa [#allocation8], 0 }
   0x7   :  { %18 = vsyncpa [#allocation8 + $0x1], 0  ;;  %s2451_s21 = smov 0   ;;  %s2453_s22 = smov 0  }
   0x8   :  { %s2455_s23 = smov 0   ;;  %s2457_s24 = smov 0  }
   0x9   :  { %s2459_s25 = smov 0   ;;  %s2461_s26 = smov 0  }
   0xa LB: > { %3035 = sst [smem:[#allocation19_spill]] %s2377_s21  ;;  %s1683_s27 = sadd.s32 4294967295, %s2397_s26   ;;  %s2397_s26 = sphi %s2461_s26, %s24_s26   ;;  %s2393_s25 = sphi %s2459_s25, %s3059_s25   ;;  %s2389_s24 = sphi %s2457_s24, %s3058_s24   ;;  %s2385_s23 = sphi %s2455_s23, %s3057_s23   ;;  %s2381_s22 = sphi %s2453_s22, %s3056_s22   ;;  %s2377_s21 = sphi %s2451_s21, %s3055_s21  }
   0xb   : > { %s1684_s28 = sadd.s32 4294967294, %s2397_s26   ;;  %p58_p0 = scmp.ne.s32.totalorder %s2381_s22, %s2377_s21 }
   0xc   : > { %p2485_p1 = scmp.eq.s32.totalorder %s1683_s27, 0  ;;  %p2489_p2 = scmp.eq.s32.totalorder %s1683_s27, 1 }
   0xd   : > { %p195_p3 = scmp.eq.s32.totalorder %s1684_s28, 1  ;;  %p1685_p5 = scmp.ge.s32.totalorder %s2397_s26, 1 }
   0xe   : > { %s3036_s29 = scalar_select %p2485_p1, 1, 0 }
   0xf   : > { %s3037_s30 = scalar_select %p2489_p2, 1, 0 }
  0x10   : > { %p2495_p4 = por %p2485_p1, %p58_p0  ;;  %p2500_p6 = por %p195_p3, %p58_p0 }
  0x11   : > { %p202_p7 = scmp.lt.s32.totalorder %s2397_s26, 3  ;;  %s2399_s10 = smov [#allocation9]  }
  0x12   : > { %s3038_s7 = scalar_select %p2495_p4, 1, 0 }
  0x13   : > { %s3039_s8 = scalar_select %p2500_p6, 1, 0 }
  0x14   : > { %p2505_p8 = pnand %p1685_p5, %p202_p7  ;;  %s214_s11 = sshll.u32 %s2399_s10, 4  ;;  %s2509_s11 = int_to_ptr.vmem [resolvable:$true] %s214_s11 }
  0x15   : > { %3040 = sst [smem:[#allocation20_spill]] %s3039_s8  ;;  %s2400_s13 = smov [#allocation11]  }
  0x16   : > { %s3041_s9 = scalar_select %p2505_p8, 1, 0 }
  0x17   : > { %p2072_p9 = pneg %p2505_p8  ;;  %s227_s14 = sshll.u32 %s2400_s13, 4  ;;  %s2520_s14 = int_to_ptr.vmem [resolvable:$true] %s227_s14 }
  0x18   : > { %s2401_s15 = smov [#allocation12]   ;;  %s2193_s19 = scalar_lea.hbm %s3021_s1, 1024 }
  0x19   : > { %p2516_p11 = pnand %p2072_p9, %p2485_p1  ;;  %s2522_s16 = sshll.u32 %s2401_s15, 4  ;;  %s244_s16 = int_to_ptr.vmem [resolvable:$true] %s2522_s16 }
  0x1a   : > { %p2194_p12 = scmp.ne.s32.totalorder %s3021_s1, %s2193_s19  ;;  %p2200_p5 = scmp.lt.u32.totalorder %s2193_s19, %s3021_s1 }
  0x1b   : > { %p2532_p13 = pneg %p2516_p11 }
  0x1d   : > { %p2196_p0 = pnand %p2532_p13, %p2194_p12 }
  0x1f   : > { %p2197_p3 = pneg %p2196_p0 }
  0x21   : > { %p2202_p7 = pnand %p2200_p5, %p2197_p3 }
  0x23   : > { %2205 = shalt.err (!%p2202_p7)
}
  0x24   : > { %s2206_s15 = scalar_lea.vmem %s2509_s11, 1024  ;;  %p2214_p1 = scmp.lt.s32.totalorder %s2509_s11, %s2509_s11 }
  0x25   : > { %p2207_p9 = scmp.ne.s32.totalorder %s2509_s11, %s2206_s15  ;;  %p2215_p4 = scmp.lt.s32.totalorder %s2206_s15, %s2206_s15 }
  0x27   : > { %p2209_p10 = pnand %p2207_p9, %p2532_p13  ;;  %p2216_p12 = por %p2215_p4, %p2214_p1 }
  0x29   : > { %p2210_p6 = pneg %p2209_p10 }
  0x2b   : > { %p2217_p0 = pnand %p2216_p12, %p2210_p6 }
  0x2d   : > { %2220 = shalt.err (!%p2217_p0)
}
  0x2e   : > { %s2402_s17 = smov 512   ;;  %s2403_s18 = smov 32  }
  0x2f   : > { %2075 = dma.hbm_to_vmem [thread:$0]  (!%p2516_p11), %s3021_s1, 1024, %s2509_s11, [#allocation10], %s2402_s17, %s2402_s17, %s2403_s18  }
  0x30   : > { %s2221_s13 = scalar_lea.hbm %s3022_s2, 8192 }
  0x31   : > { %p2222_p1 = scmp.ne.s32.totalorder %s3022_s2, %s2221_s13  ;;  %p2228_p10 = scmp.lt.u32.totalorder %s2221_s13, %s3022_s2 }
  0x33   : > { %p2224_p4 = pnand %p2222_p1, %p2532_p13 }
  0x35   : > { %p2225_p6 = pneg %p2224_p4 }
  0x37   : > { %p2230_p3 = pnand %p2228_p10, %p2225_p6 }
  0x39   : > { %2233 = shalt.err (!%p2230_p3)
}
  0x3a   : > { %s2234_s11 = scalar_lea.vmem %s2520_s14, 8192  ;;  %p2242_p12 = scmp.lt.s32.totalorder %s2520_s14, %s2520_s14 }
  0x3b   : > { %p2235_p5 = scmp.ne.s32.totalorder %s2520_s14, %s2234_s11  ;;  %p2243_p0 = scmp.lt.s32.totalorder %s2234_s11, %s2234_s11 }
  0x3d   : > { %p2237_p7 = pnand %p2235_p5, %p2532_p13  ;;  %p2244_p1 = por %p2243_p0, %p2242_p12 }
  0x3f   : > { %p2238_p9 = pneg %p2237_p7 }
  0x41   : > { %p2245_p4 = pnand %p2244_p1, %p2238_p9 }
  0x43   : > { %2248 = shalt.err (!%p2245_p4)
}
  0x44   : > { %2078 = dma.hbm_to_vmem [thread:$0]  (!%p2516_p11), %s3022_s2, 8192, %s2520_s14, [#allocation10], %s2402_s17, %s2402_s17, %s2403_s18  }
  0x45   : > { %s2249_s20 = scalar_lea.hbm %s3024_s4, 2048 }
  0x46   : > { %p2250_p6 = scmp.ne.s32.totalorder %s3024_s4, %s2249_s20  ;;  %p2256_p5 = scmp.lt.u32.totalorder %s2249_s20, %s3024_s4 }
  0x48   : > { %p2252_p10 = pnand %p2250_p6, %p2532_p13 }
  0x4a   : > { %p2253_p3 = pneg %p2252_p10 }
  0x4c   : > { %p2258_p7 = pnand %p2256_p5, %p2253_p3 }
  0x4e   : > { %2261 = shalt.err (!%p2258_p7)
}
  0x4f   : > { %s2262_s11 = scalar_lea.vmem %s244_s16, 2048  ;;  %p2270_p1 = scmp.lt.s32.totalorder %s244_s16, %s244_s16 }
  0x50   : > { %p2263_p9 = scmp.ne.s32.totalorder %s244_s16, %s2262_s11  ;;  %p2271_p4 = scmp.lt.s32.totalorder %s2262_s11, %s2262_s11 }
  0x52   : > { %p2265_p12 = pnand %p2263_p9, %p2532_p13  ;;  %p2272_p8 = por %p2271_p4, %p2270_p1 }
  0x54   : > { %p2266_p0 = pneg %p2265_p12 }
  0x56   : > { %p2273_p2 = pnand %p2272_p8, %p2266_p0 }
  0x58   : > { %2276 = shalt.err (!%p2273_p2)
}
  0x59   : > { %s2404_s14 = smov 128   ;;  %s2405_s28 = smov 8  }
  0x5a   : > { %2081 = dma.hbm_to_vmem [thread:$0]  (!%p2516_p11), %s3024_s4, 2048, %s244_s16, [#allocation13], %s2404_s14, %s2404_s14, %s2405_s28  }
  0x5b   : > { %s45_s21 = sadd.s32 1, %s2385_s23  ;;  %s33_s8 = sadd.s32 1, %s2393_s25 }
  0x5c   : > { %p52_p2 = scmp.ne.s32.totalorder %s2385_s23, %s2381_s22  ;;  %p34_p8 = scmp.ge.s32.totalorder %s33_s8, 2 }
  0x5d   : > { %p53_p13 = scmp.eq.s32.totalorder %s2397_s26, 0  ;;  %p3044_p6 = scmp.ne.s32.totalorder %s3037_s30, 0 }
  0x5e   : > { %p2093_p3 = scmp.lt.s32.totalorder %s2397_s26, 2  ;;  %s3061_s8 = smov (%p34_p8, %s33_s8), 0 }
  0x5f   : > { %p2604_p10 = por %p3044_p6, %p52_p2  ;;  %p54_p5 = por %p53_p13, %p52_p2 }
  0x60   : > { %s260_s12 = sand.u32 1, %s2385_s23   ;;  %s40_s20 = ssub.s32 %s2393_s25, %s3061_s8 }
  0x61   : > { %p43_p7 = scmp.eq.s32.totalorder %s40_s20, 0  ;;  %s1690_s16 = sshll.u32 %s260_s12, 3 }
  0x62   : > { %s1714_s27 = sshll.u32 %s2393_s25, 7  ;;  %s264_s11 = scalar_lea.vmem [#allocation6], %s1690_s16 }
  0x63   : > { %s2616_s10 = scalar_select %p43_p7, %s2385_s23, %s45_s21  }
  0x64   : > { %s2621_s30 = scalar_lea.hbm %s3020_s0, %s1714_s27  ;;  %s272_s14 = sshll.u32 %s264_s11, 4  ;;  %s2623_s14 = int_to_ptr.vmem [resolvable:$true] %s272_s14 }
  0x65   : > { %p2627_p11 = pnand %p2093_p3, %p54_p5  ;;  %s2631_s17 = scalar_lea.sflag [#allocation7], %s260_s12 }
  0x66   : > { %s2277_s6 = scalar_lea.hbm %s2621_s30, 128  ;;  %s2282_s16 = scalar_lea.hbm %s3020_s0, 256 }
  0x67   : > { %p2278_p9 = scmp.ne.s32.totalorder %s2621_s30, %s2277_s6  ;;  %p2279_p12 = pneg %p2627_p11 }
  0x68   : > { %p2283_p4 = scmp.lt.u32.totalorder %s2621_s30, %s3020_s0  ;;  %p2284_p2 = scmp.lt.u32.totalorder %s2282_s16, %s2277_s6 }
  0x69   : > { %p2280_p0 = pnand %p2279_p12, %p2278_p9  ;;  %p2286_p13 = scmp.lt.u32.totalorder %s2277_s6, %s2621_s30 }
  0x6a   : > { %p2285_p8 = por %p2284_p2, %p2283_p4 }
  0x6b   : > { %p2281_p1 = pneg %p2280_p0 }
  0x6c   : > { %p2287_p6 = por %p2286_p13, %p2285_p8 }
  0x6e   : > { %p2288_p3 = pnand %p2287_p6, %p2281_p1 }
  0x70   : > { %2291 = shalt.err (!%p2288_p3)
}
  0x71   : > { %s2292_s12 = scalar_lea.vmem %s2623_s14, 128  ;;  %s2406_s15 = smov [#allocation6]  }
  0x72   : > { %p2293_p5 = scmp.ne.s32.totalorder %s2623_s14, %s2292_s12  ;;  %s2297_s11 = sshll.u32 %s2406_s15, 4  ;;  %s2298_s11 = int_to_ptr.vmem [resolvable:$false] %s2297_s11 }
  0x73   : > { %s2299_s21 = scalar_lea.vmem %s2298_s11, 256  ;;  %p2300_p0 = scmp.lt.s32.totalorder %s2623_s14, %s2298_s11 }
  0x74   : > { %p2295_p7 = pnand %p2293_p5, %p2279_p12  ;;  %p2301_p4 = scmp.lt.s32.totalorder %s2299_s21, %s2292_s12 }
  0x76   : > { %p2296_p9 = pneg %p2295_p7  ;;  %p2302_p2 = por %p2301_p4, %p2300_p0 }
  0x78   : > { %p2303_p8 = pnand %p2302_p2, %p2296_p9 }
  0x7a   : > { %2306 = shalt.err (!%p2303_p8)
}
  0x7b   : > { %s2407_s6 = smov 2   ;;  %p3047_p12 = scmp.ne.s32.totalorder %s3041_s9, 0 }
  0x7c   : > { %2085 = dma.hbm_to_vmem [thread:$0]  (!%p2627_p11), %s2621_s30, 128, %s2623_s14, %s2631_s17, %s2403_s18, %s2403_s18, %s2407_s6  }
  0x7d   : > { %284 = sbr.rel (%p3047_p12) target bundleno = 1507 (0x5e3), region = 44  ;;  %s2664_s20 = sand.u32 (!%p3047_p12), 1, %s2381_s22  }
  0x7e   : > { %s1694_s16 = sshll.u32 (!%p3047_p12), %s2664_s20, 3  ;;  %s287_s27 = scalar_lea.sflag (!%p3047_p12), [#allocation7], %s2664_s20 }
  0x7f   : > { %s2668_s13 = scalar_lea.vmem (!%p3047_p12), [#allocation6], %s1694_s16  ;;  %p3048_p1 = scmp.ne.s32.totalorder (!%p3047_p12), %s3038_s7, 0 }
  0x84   : > { %2360 = dma.done.wait (%p3048_p1), %s287_s27, 128  }
  0x85   : > { %2362 = vsyncadd (%p3048_p1), %s287_s27, 4294967168  ;;  %p3049_p11 = scmp.ne.s32.totalorder %s3036_s29, 0 }
  0x87   : > { %2364 = dma.done.wait (%p3049_p11), [#allocation10], 9216  }
  0x88   : > { %2366 = vsyncadd (%p3049_p11), [#allocation10], 4294958080 }
  0x89   : > { %2368 = dma.done.wait (%p3049_p11), [#allocation13], 2048  }
  0x8a   : > { %2370 = vsyncadd (%p3049_p11), [#allocation13], 4294965248  ;;  %s2682_s9 = scalar_lea.vmem [#allocation14], %s1694_s16  ;;  %p1699_p13 = scmp.ne.s32.totalorder %s2389_s24, 0 }
  0x8b   : > { %v2408_v0 = vmov (!%p1699_p13), 0.0  }
  0x8c   : > { %336 = sbr.rel (%p1699_p13) target bundleno = 147 (0x93), region = 64  ;;  %337 = vst [vmem:[#allocation2] sm:$0x3] (!%p1699_p13), %v2408_v0  ;;  %338 = vst [vmem:[#allocation3] sm:$0x3] (!%p1699_p13), %v2408_v0 }
  0x93 PF: > { %v344_v1 = vld [vmem:[#allocation9 + $0x8] sm:$0xff]  ;;  %v343_v3 = vld [vmem:[#allocation9] sm:$0xff]  ;;  %v353_v4 = vlaneseq  ;;  %v2409_v7 = vmov 0.0   ;;  %v346_v8 = vld [vmem:[#allocation9 + $0x18] sm:$0xff]  ;;  %v2410_v10 = vmov 1983009808  }
  0x94   : > { %v348_v2 = vld [vmem:[#allocation9 + $0x28] sm:$0xff]  ;;  %v347_v6 = vld [vmem:[#allocation9 + $0x20] sm:$0xff]  ;;  %461 = vmatprep.mubr.f32.mxu1 %v2409_v7  ;;  %v350_v9 = vld [vmem:[#allocation9 + $0x38] sm:$0xff]  ;;  %v380_v11 = vunpack.c.l.s4 %v2410_v10  ;;  %718 = vmatprep.mubr.f32.mxu0 %v2409_v7  ;;  %vm394_vm0 = vcmask 130048   ;;  %vm2412_vm1 = vmmov 0   ;;  %s1715_s14 = sshll.u32 %s2389_s24, 7 }
  0x95   : > { %v1768_v5 = vpack.c.bf16 %v348_v2, %v344_v1  ;;  %v1770_v12 = vpack.c.bf16 %v347_v6, %v343_v3  ;;  %v1772_v13 = vpack.c.bf16 %v350_v9, %v346_v8  ;;  %v339_v14 = vld [vmem:[%s2668_s13] sm:$0x3]  ;;  %v340_v15 = vld [vmem:[%s2668_s13 + $0x2] sm:$0x3]  ;;  %v341_v16 = vld [vmem:[%s2668_s13 + $0x4] sm:$0x3] }
  0x96   : > { %v342_v17 = vld [vmem:[%s2668_s13 + $0x6] sm:$0x3]  ;;  %v2691_v18 = vshrl.u32 %v353_v4, 7  ;;  %v377_v19 = vcombine.low %v339_v14, %v340_v15  ;;  %v381_v20 = vunpack.c.0.s8 %v380_v11  ;;  %v588_v22 = vld [vmem:[#allocation11 + $0x8] sm:$0xff]  ;;  %v587_v24 = vld [vmem:[#allocation11] sm:$0xff]  ;;  %s1569_s28 = sshll.u32 %s2682_s9, 4  ;;  %s2969_s28 = int_to_ptr.vmem [resolvable:$true] %s1569_s28 }
  0x97   : > { %1769 = vmatprep.subr.bf16.mxu1 %v1768_v5  ;;  %v378_v21 = vcombine.low %v341_v16, %v342_v17  ;;  %v592_v23 = vld [vmem:[#allocation11 + $0x28] sm:$0xff]  ;;  %v345_v26 = vld [vmem:[#allocation9 + $0x10] sm:$0xff]  ;;  %v591_v29 = vld [vmem:[#allocation11 + $0x20] sm:$0xff]  ;;  %s3050_s15 = sld [smem:[#allocation21_spill]]  ;;  %s1555_s21 = scalar_lea.sflag [#allocation8], %s2664_s20 }
  0x98   : > { %1771 = vmatpush1.bf16.msra.mxu1 %v1770_v12  ;;  %v2694_v25 = vsub.s32 %v381_v20, %v2691_v18  ;;  %v349_v27 = vld [vmem:[#allocation9 + $0x30] sm:$0xff]  ;;  %v2696_v28 = vpack.c.bf16 %v592_v23, %v588_v22  ;;  %v2698_v30 = vpack.c.bf16 %v591_v29, %v587_v24  ;;  %v590_v31 = vld [vmem:[#allocation11 + $0x18] sm:$0xff]  ;;  %v596_v33 = vld [vmem:[#allocation11 + $0x48] sm:$0xff]  ;;  %s2307_s24 = scalar_lea.vmem %s2969_s28, 128  ;;  %s2413_s6 = smov [#allocation14]  }
  0x99   : > { %1773 = vmatprep.subr.bf16.mxu1 %v1772_v13  ;;  %v594_v32 = vld [vmem:[#allocation11 + $0x38] sm:$0xff]  ;;  %v600_v36 = vld [vmem:[#allocation11 + $0x68] sm:$0xff]  ;;  %v595_v37 = vld [vmem:[#allocation11 + $0x40] sm:$0xff]  ;;  %v1774_v39 = vpack.c.bf16 %v349_v27, %v345_v26  ;;  %p2308_p6 = scmp.ne.s32.totalorder %s2969_s28, %s2307_s24  ;;  %s2311_s16 = sshll.u32 %s2413_s6, 4  ;;  %s2312_s16 = int_to_ptr.vmem [resolvable:$false] %s2311_s16 }
  0x9a   : > { %v385_v34 = vrot.slane %v377_v19, %v2694_v25  ;;  %v392_v35 = vrot.slane %v378_v21, %v2694_v25  ;;  %1777 = vmatprep.subr.bf16.mxu0 %v2696_v28  ;;  %v599_v38 = vld [vmem:[#allocation11 + $0x60] sm:$0xff]  ;;  %v589_v40 = vld [vmem:[#allocation11 + $0x10] sm:$0xff]  ;;  %v2704_v42 = vpack.c.bf16 %v600_v36, %v596_v33  ;;  %v2706_v44 = vpack.c.bf16 %v594_v32, %v590_v31  ;;  %v598_v46 = vld [vmem:[#allocation11 + $0x58] sm:$0xff]  ;;  %s2313_s27 = scalar_lea.vmem %s2312_s16, 256  ;;  %p2314_p7 = scmp.lt.s32.totalorder %s2969_s28, %s2312_s16 }
  0x9b   : > { %1779 = vmatpush1.bf16.msra.mxu0 %v2698_v30  ;;  %v593_v41 = vld [vmem:[#allocation11 + $0x30] sm:$0xff]  ;;  %v2708_v45 = vpack.c.bf16 %v599_v38, %v595_v37  ;;  %v604_v47 = vld [vmem:[#allocation11 + $0x88] sm:$0xff]  ;;  %v602_v49 = vld [vmem:[#allocation11 + $0x78] sm:$0xff]  ;;  %p2309_p3 = pnand %p2308_p6, %p2604_p10  ;;  %p2315_p9 = scmp.lt.s32.totalorder %s2313_s27, %s2307_s24 }
  0x9c   : > { %v393_v43 = vcombine.low %v385_v34, %v392_v35  ;;  %v608_v48 = vld [vmem:[#allocation11 + $0xa8] sm:$0xff]  ;;  %1781 = vmatprep.subr.bf16.mxu0 %v2704_v42  ;;  %v603_v51 = vld [vmem:[#allocation11 + $0x80] sm:$0xff]  ;;  %v2715_v53 = vpack.c.bf16 %v593_v41, %v589_v40  ;;  %v2719_v56 = vpack.c.bf16 %v602_v49, %v598_v46  ;;  %v597_v57 = vld [vmem:[#allocation11 + $0x50] sm:$0xff] }
  0x9d   : > { %v2711_v50 = vpack.c.bf16 %v608_v48, %v604_v47  ;;  %v607_v52 = vld [vmem:[#allocation11 + $0xa0] sm:$0xff]  ;;  %v612_v54 = vld [vmem:[#allocation11 + $0xc8] sm:$0xff]  ;;  %v601_v58 = vld [vmem:[#allocation11 + $0x70] sm:$0xff]  ;;  %s2967_s11 = scalar_lea.hbm %s3050_s15, %s1715_s14  ;;  %p2310_p5 = pneg %p2309_p3 }
  0x9e   : > { %1700 = vmatmul.mubr.msk.f32.vlgmr.msra.gmra.mrb[0].mxu1 %vm394_vm0, %v393_v43  ;;  %v616_v55 = vld [vmem:[#allocation11 + $0xe8] sm:$0xff]  ;;  %v2721_v59 = vpack.c.bf16 %v607_v52, %v603_v51  ;;  %v606_v60 = vld [vmem:[#allocation11 + $0x98] sm:$0xff]  ;;  %v611_v63 = vld [vmem:[#allocation11 + $0xc0] sm:$0xff]  ;;  %v2728_v3 = vpack.c.bf16 %v601_v58, %v597_v57  ;;  %p2316_p0 = por %p2315_p9, %p2314_p7 }
  0x9f   : > { %1775 = vmatpush1.bf16.msra.mxu1 %v1774_v39  ;;  %532 = vmatprep.mubr.f32.mxu1 %v2409_v7  ;;  %v610_v61 = vld [vmem:[#allocation11 + $0xb8] sm:$0xff]  ;;  %v2724_v62 = vpack.c.bf16 %v616_v55, %v612_v54  ;;  %v615_v0 = vld [vmem:[#allocation11 + $0xe0] sm:$0xff]  ;;  %v620_v1 = vld [vmem:[#allocation11 + $0x108] sm:$0xff] }
  0xa0   : > { %1809 = vmatprep.subr.bf16.mxu1 %v2706_v44  ;;  %1783 = vmatpush1.bf16.msra.mxu0 %v2708_v45  ;;  %v624_v2 = vld [vmem:[#allocation11 + $0x128] sm:$0xff]  ;;  %v2733_v4 = vpack.c.bf16 %v610_v61, %v606_v60  ;;  %v605_v5 = vld [vmem:[#allocation11 + $0x90] sm:$0xff]  ;;  %v2735_v8 = vpack.c.bf16 %v615_v0, %v611_v63  ;;  %v614_v9 = vld [vmem:[#allocation11 + $0xd8] sm:$0xff]  ;;  %p2317_p4 = pnand %p2316_p0, %p2310_p5 }
  0xa1   : > { %1785 = vmatprep.subr.bf16.mxu0 %v2711_v50  ;;  %v609_v6 = vld [vmem:[#allocation11 + $0xb0] sm:$0xff]  ;;  %v618_v10 = vld [vmem:[#allocation11 + $0xf8] sm:$0xff]  ;;  %v2738_v11 = vpack.c.bf16 %v624_v2, %v620_v1  ;;  %v619_v12 = vld [vmem:[#allocation11 + $0x100] sm:$0xff] }
  0xa2   : > { %1701 = vmatmul.mubr.msk.f32.vlgmr.msra.gmra.mrb[2].mxu1 %vm394_vm0, %v393_v43  ;;  %v623_v13 = vld [vmem:[#allocation11 + $0x120] sm:$0xff]  ;;  %v628_v14 = vld [vmem:[#allocation11 + $0x148] sm:$0xff]  ;;  %v2741_v16 = vpack.c.bf16 %v609_v6, %v605_v5  ;;  %v2745_v17 = vpack.c.bf16 %v618_v10, %v614_v9  ;;  %v613_v19 = vld [vmem:[#allocation11 + $0xd0] sm:$0xff] }
  0xa3   : > { %1811 = vmatpush1.bf16.msra.mxu1 %v2715_v53  ;;  %789 = vmatprep.mubr.f32.mxu1 %v2409_v7  ;;  %v632_v15 = vld [vmem:[#allocation11 + $0x168] sm:$0xff]  ;;  %v617_v20 = vld [vmem:[#allocation11 + $0xf0] sm:$0xff]  ;;  %v2747_v21 = vpack.c.bf16 %v623_v13, %v619_v12  ;;  %v622_v22 = vld [vmem:[#allocation11 + $0x118] sm:$0xff] }
  0xa4   : > { %1813 = vmatprep.subr.bf16.mxu1 %v2719_v56  ;;  %1787 = vmatpush1.bf16.msra.mxu0 %v2721_v59  ;;  %v626_v23 = vld [vmem:[#allocation11 + $0x138] sm:$0xff]  ;;  %v2750_v24 = vpack.c.bf16 %v632_v15, %v628_v14  ;;  %v627_v26 = vld [vmem:[#allocation11 + $0x140] sm:$0xff]  ;;  %v636_v29 = vld [vmem:[#allocation11 + $0x188] sm:$0xff]  ;;  %v2753_v32 = vpack.c.bf16 %v617_v20, %v613_v19  ;;  %v355_v19 = vsub.s32 0, %v2691_v18 }
  0xa5   : > { %1789 = vmatprep.subr.bf16.mxu0 %v2724_v62  ;;  %v631_v27 = vld [vmem:[#allocation11 + $0x160] sm:$0xff]  ;;  %v640_v31 = vld [vmem:[#allocation11 + $0x1a8] sm:$0xff]  ;;  %v2757_v33 = vpack.c.bf16 %v626_v23, %v622_v22  ;;  %v621_v34 = vld [vmem:[#allocation11 + $0x110] sm:$0xff]  ;;  %v359_v22 = vsub.s32 1, %v2691_v18 }
  0xa6   : > { %v625_v35 = vld [vmem:[#allocation11 + $0x130] sm:$0xff]  ;;  %v2759_v36 = vpack.c.bf16 %v631_v27, %v627_v26  ;;  %v630_v37 = vld [vmem:[#allocation11 + $0x158] sm:$0xff]  ;;  %v2762_v39 = vpack.c.bf16 %v640_v31, %v636_v29  ;;  %v635_v40 = vld [vmem:[#allocation11 + $0x180] sm:$0xff]  ;;  %v363_v26 = vsub.s32 2, %v2691_v18  ;;  %v367_v29 = vsub.s32 3, %v2691_v18 }
  0xa7   : > { %1815 = vmatpush1.bf16.msra.mxu1 %v2728_v3  ;;  %v634_v38 = vld [vmem:[#allocation11 + $0x178] sm:$0xff]  ;;  %v639_v41 = vld [vmem:[#allocation11 + $0x1a0] sm:$0xff]  ;;  %v644_v43 = vld [vmem:[#allocation11 + $0x1c8] sm:$0xff]  ;;  %v2765_v47 = vpack.c.bf16 %v625_v35, %v621_v34 }
  0xa8   : > { %1817 = vmatprep.subr.bf16.mxu1 %v2733_v4  ;;  %1791 = vmatpush1.bf16.msra.mxu0 %v2735_v8  ;;  %v648_v46 = vld [vmem:[#allocation11 + $0x1e8] sm:$0xff]  ;;  %v2769_v48 = vpack.c.bf16 %v634_v38, %v630_v37  ;;  %v629_v49 = vld [vmem:[#allocation11 + $0x150] sm:$0xff]  ;;  %v2771_v52 = vpack.c.bf16 %v639_v41, %v635_v40  ;;  %v638_v54 = vld [vmem:[#allocation11 + $0x198] sm:$0xff] }
  0xa9   : > { %1793 = vmatprep.subr.bf16.mxu0 %v2738_v11  ;;  %v633_v51 = vld [vmem:[#allocation11 + $0x170] sm:$0xff]  ;;  %v642_v55 = vld [vmem:[#allocation11 + $0x1b8] sm:$0xff]  ;;  %v2774_v57 = vpack.c.bf16 %v648_v46, %v644_v43  ;;  %v643_v58 = vld [vmem:[#allocation11 + $0x1c0] sm:$0xff] }
  0xaa   : > { %v647_v60 = vld [vmem:[#allocation11 + $0x1e0] sm:$0xff]  ;;  %v2777_v61 = vpack.c.bf16 %v633_v51, %v629_v49  ;;  %v2781_v63 = vpack.c.bf16 %v642_v55, %v638_v54  ;;  %v637_v0 = vld [vmem:[#allocation11 + $0x190] sm:$0xff]  ;;  %v646_v5 = vld [vmem:[#allocation11 + $0x1d8] sm:$0xff] }
  0xab   : > { %1819 = vmatpush1.bf16.msra.mxu1 %v2741_v16  ;;  %v641_v1 = vld [vmem:[#allocation11 + $0x1b0] sm:$0xff]  ;;  %v2783_v2 = vpack.c.bf16 %v647_v60, %v643_v58  ;;  %v650_v6 = vld [vmem:[#allocation11 + $0x1f8] sm:$0xff]  ;;  %v651_v14 = vld [vmem:[#allocation2] sm:$0x3] }
  0xac   : > { %1821 = vmatprep.subr.bf16.mxu1 %v2745_v17  ;;  %1795 = vmatpush1.bf16.msra.mxu0 %v2747_v21  ;;  %v2787_v9 = vpack.c.bf16 %v641_v1, %v637_v0  ;;  %v2791_v10 = vpack.c.bf16 %v650_v6, %v646_v5  ;;  %v645_v12 = vld [vmem:[#allocation11 + $0x1d0] sm:$0xff]  ;;  %v351_v20 = vld [vmem:[%s3023_s3] sm:$0xf] }
  0xad   : > { %1797 = vmatprep.subr.bf16.mxu0 %v2750_v24  ;;  %v649_v13 = vld [vmem:[#allocation11 + $0x1f0] sm:$0xff]  ;;  %v356_v23 = vrot.slane %v351_v20, %v355_v19  ;;  %v360_v27 = vrot.slane %v351_v20, %v359_v22  ;;  %v364_v37 = vrot.slane %v351_v20, %v363_v26  ;;  %v368_v40 = vrot.slane %v351_v20, %v367_v29 }
  0xae   : > { %v2795_v15 = vpack.c.bf16 %v649_v13, %v645_v12 }
  0xaf   : > { %1823 = vmatpush1.bf16.msra.mxu1 %v2753_v32 }
  0xb0   : > { %1825 = vmatprep.subr.bf16.mxu1 %v2757_v33  ;;  %1799 = vmatpush1.bf16.msra.mxu0 %v2759_v36 }
  0xb1   : > { %1801 = vmatprep.subr.bf16.mxu0 %v2762_v39 }
  0xb3   : > { %1827 = vmatpush1.bf16.msra.mxu1 %v2765_v47 }
  0xb4   : > { %1829 = vmatprep.subr.bf16.mxu1 %v2769_v48  ;;  %1803 = vmatpush1.bf16.msra.mxu0 %v2771_v52 }
  0xb5   : > { %1805 = vmatprep.subr.bf16.mxu0 %v2774_v57 }
  0xb7   : > { %1831 = vmatpush1.bf16.msra.mxu1 %v2777_v61 }
  0xb8   : > { %1833 = vmatprep.subr.bf16.mxu1 %v2781_v63  ;;  %1807 = vmatpush1.bf16.msra.mxu0 %v2783_v2 }
  0xb9   : > { %1841 = vmatprep.subr.bf16.mxu0 %v2696_v28 }
  0xbb   : > { %1835 = vmatpush1.bf16.msra.mxu1 %v2787_v9  ;;  %719 = vmatmul.mubr.f32.vlgmr.msra.gmra.mrb[0].mxu0 %v651_v14 }
  0xbc   : > { %1837 = vmatprep.subr.bf16.mxu1 %v2791_v10  ;;  %1843 = vmatpush1.bf16.msra.mxu0 %v2698_v30 }
  0xbd   : > { %1845 = vmatprep.subr.bf16.mxu0 %v2704_v42  ;;  %906 = vmatprep.mubr.f32.mxu0 %v2409_v7 }
  0xbf   : > { %1839 = vmatpush1.bf16.msra.mxu1 %v2795_v15 }
  0xc0   : > { %1873 = vmatprep.subr.bf16.mxu1 %v2706_v44  ;;  %1847 = vmatpush1.bf16.msra.mxu0 %v2708_v45 }
  0xc1   : > { %1849 = vmatprep.subr.bf16.mxu0 %v2711_v50 }
  0xc2   : > { %790 = vmatmul.mubr.f32.vlgmr.msra.gmra.mrb[4].mxu1 %v651_v14 }
  0xc3   : > { %1875 = vmatpush1.bf16.msra.mxu1 %v2715_v53  ;;  %977 = vmatprep.mubr.f32.mxu1 %v2409_v7 }
  0xc4   : > { %1877 = vmatprep.subr.bf16.mxu1 %v2719_v56  ;;  %1851 = vmatpush1.bf16.msra.mxu0 %v2721_v59 }
  0xc5   : > { %1853 = vmatprep.subr.bf16.mxu0 %v2724_v62 }
  0xc7   : > { %1879 = vmatpush1.bf16.msra.mxu1 %v2728_v3 }
  0xc8   : > { %1881 = vmatprep.subr.bf16.mxu1 %v2733_v4  ;;  %1855 = vmatpush1.bf16.msra.mxu0 %v2735_v8 }
  0xc9   : > { %1857 = vmatprep.subr.bf16.mxu0 %v2738_v11 }
  0xcb   : > { %1883 = vmatpush1.bf16.msra.mxu1 %v2741_v16 }
  0xcc   : > { %1885 = vmatprep.subr.bf16.mxu1 %v2745_v17  ;;  %1859 = vmatpush1.bf16.msra.mxu0 %v2747_v21 }
  0xcd   : > { %1861 = vmatprep.subr.bf16.mxu0 %v2750_v24 }
  0xcf   : > { %1887 = vmatpush1.bf16.msra.mxu1 %v2753_v32 }
  0xd0   : > { %1889 = vmatprep.subr.bf16.mxu1 %v2757_v33  ;;  %1863 = vmatpush1.bf16.msra.mxu0 %v2759_v36 }
  0xd1   : > { %1865 = vmatprep.subr.bf16.mxu0 %v2762_v39 }
  0xd3   : > { %1891 = vmatpush1.bf16.msra.mxu1 %v2765_v47 }
  0xd4   : > { %1893 = vmatprep.subr.bf16.mxu1 %v2769_v48  ;;  %1867 = vmatpush1.bf16.msra.mxu0 %v2771_v52 }
  0xd5   : > { %1869 = vmatprep.subr.bf16.mxu0 %v2774_v57 }
  0xd7   : > { %1895 = vmatpush1.bf16.msra.mxu1 %v2777_v61 }
  0xd8   : > { %1897 = vmatprep.subr.bf16.mxu1 %v2781_v63  ;;  %1871 = vmatpush1.bf16.msra.mxu0 %v2783_v2 }
  0xd9   : > { %1905 = vmatprep.subr.bf16.mxu0 %v2696_v28 }
  0xdb   : > { %1899 = vmatpush1.bf16.msra.mxu1 %v2787_v9 }
  0xdc   : > { %1901 = vmatprep.subr.bf16.mxu1 %v2791_v10 }
  0xdf   : > { %1903 = vmatpush1.bf16.msra.mxu1 %v2795_v15 }
  0xe0   : > { %1937 = vmatprep.subr.bf16.mxu1 %v2706_v44 }
 0x171   : > { %v463_v31 = vpop.f32.mrb[0].mxu1 }
 0x172   : > { %v464_v34 = vadd.f32 %v463_v31, %v356_v23  ;;  %v465_v35 = vpop.f32.mrb[1].mxu1 }
 0x173   : > { %v466_v38 = vadd.f32 %v465_v35, %v360_v27 }
 0x175   : > { %v543_v41 = vcombine.low %v464_v34, %v466_v38  ;;  %v544_v43 = vcombine.high %v464_v34, %v466_v38  ;;  %v534_v46 = vpop.f32.mrb[2].mxu1 }
 0x176   : > { %v535_v49 = vadd.f32 %v534_v46, %v364_v37  ;;  %v536_v51 = vpop.f32.mrb[3].mxu1 }
 0x177   : > { %v537_v54 = vadd.f32 %v536_v51, %v368_v40  ;;  %v2842_v60 = vrot.slane %v543_v41, %v2694_v25  ;;  %v2845_v0 = vrot.slane %v544_v43, %v2694_v25  ;;  %v652_v43 = vld [vmem:[#allocation3] sm:$0x3] }
 0x179   : > { %v545_v55 = vcombine.low %v535_v49, %v537_v54  ;;  %v546_v58 = vcombine.high %v535_v49, %v537_v54 }
 0x17b   : > { %v2848_v18 = vrot.slane %v545_v55, %v2694_v25  ;;  %v2851_v1 = vrot.slane %v546_v58, %v2694_v25 }
 0x17d   : > { %v575_v5 = vcombine.low %v2842_v60, %v2848_v18  ;;  %v576_v6 = vcombine.high %v2842_v60, %v2848_v18  ;;  %v577_v12 = vcombine.low %v2845_v0, %v2851_v1  ;;  %v578_v13 = vcombine.high %v2845_v0, %v2851_v1  ;;  %v1417_v60 = vld [vmem:[#allocation12 + $0x20] sm:$0xff]  ;;  %v1418_v18 = vld [vmem:[#allocation12 + $0x28] sm:$0xff] }
 0x18e   : > { %v720_v14 = vpop.f32.mrb[0].mxu0 }
 0x18f   : > { %v722_v19 = vpop.f32.mrb[1].mxu0 }
 0x190   : > { %v800_v20 = vcombine.low %v720_v14, %v722_v19 }
 0x192   : > { %v808_v26 = vrot.slane %v800_v20, %v2694_v25 }
 0x195   : > { %v791_v22 = vpop.f32.mrb[4].mxu1 }
 0x196   : > { %v793_v23 = vpop.f32.mrb[5].mxu1 }
 0x197   : > { %v801_v27 = vcombine.low %v791_v22, %v793_v23 }
 0x199   : > { %v815_v29 = vrot.slane %v801_v27, %v2694_v25 }
 0x19b   : > { %v816_v31 = vcombine.low %v808_v26, %v815_v29 }
 0x19d   : > { %v818_v34 = vadd.f32 %v816_v31, %v575_v5 }
 0x19f   : > { %v1702_v35 = vmul.f32 -1.442695, %v818_v34  ;;  %v826_v40 = vrot.slane %v818_v34, 6 }
 0x1a1   : > { %2161 = vpow2.f32 %v1702_v35 }
 0x1ab   : > { %v2162_v37 = vpop.eup %2161 }
 0x1ac   : > { %v822_v38 = vadd.f32 1.0, %v2162_v37 }
 0x1ae   : > { %2163 = vrcp.f32 %v822_v38 }
 0x1af   : > { %2165 = vtanh.f32 %v826_v40 }
 0x1b8   : > { %v2164_v41 = vpop.eup %2163 }
 0x1b9   : > { %v830_v46 = vrot.slane %v2164_v41, 2  ;;  %v2166_v49 = vpop.eup %2165  ;;  %v836_v58 = vrot.slane %v2164_v41, 4 }
 0x1ba   : > { %v833_v51 = vmul.f32 %v2166_v49, %v2164_v41 }
 0x1bb   : > { %v832_v54 = vmul.f32 %v830_v46, %v652_v43 }
 0x1bd   : > { %v2863_v55 = vadd.f32 %v833_v51, %v832_v54 }
 0x1bf   : > { %2167 = vtanh.f32 %v2863_v55 }
 0x1c9   : > { %v2168_v14 = vpop.eup %2167 }
 0x1ca   : > { %v838_v5 = vmul.f32 %v2168_v14, %v836_v58 }
 0x1cc   : > { %839 = vst [vmem:[#allocation5] sm:$0x3] %v838_v5  ;;  %907 = vmatmul.mubr.f32.vlgmr.msra.gmra.mrb[2].mxu0 %v838_v5  ;;  %978 = vmatmul.mubr.f32.vlgmr.msra.gmra.mrb[6].mxu1 %v838_v5 }
 0x1cd   : > { %1907 = vmatpush1.bf16.msra.mxu0 %v2698_v30  ;;  %1939 = vmatpush1.bf16.msra.mxu1 %v2715_v53 }
 0x1ce   : > { %1909 = vmatprep.subr.bf16.mxu0 %v2704_v42  ;;  %1941 = vmatprep.subr.bf16.mxu1 %v2719_v56 }
 0x1cf   : > { %1095 = vmatprep.mubr.f32.mxu0 %v2409_v7  ;;  %1166 = vmatprep.mubr.f32.mxu1 %v2409_v7 }
 0x1d1   : > { %1911 = vmatpush1.bf16.msra.mxu0 %v2708_v45  ;;  %1943 = vmatpush1.bf16.msra.mxu1 %v2728_v3 }
 0x1d2   : > { %1913 = vmatprep.subr.bf16.mxu0 %v2711_v50  ;;  %1945 = vmatprep.subr.bf16.mxu1 %v2733_v4 }
 0x1d5   : > { %1915 = vmatpush1.bf16.msra.mxu0 %v2721_v59  ;;  %1947 = vmatpush1.bf16.msra.mxu1 %v2741_v16 }
 0x1d6   : > { %1917 = vmatprep.subr.bf16.mxu0 %v2724_v62  ;;  %1949 = vmatprep.subr.bf16.mxu1 %v2745_v17 }
 0x1d9   : > { %1919 = vmatpush1.bf16.msra.mxu0 %v2735_v8  ;;  %1951 = vmatpush1.bf16.msra.mxu1 %v2753_v32 }
 0x1da   : > { %1921 = vmatprep.subr.bf16.mxu0 %v2738_v11  ;;  %1953 = vmatprep.subr.bf16.mxu1 %v2757_v33 }
 0x1dd   : > { %1923 = vmatpush1.bf16.msra.mxu0 %v2747_v21  ;;  %1955 = vmatpush1.bf16.msra.mxu1 %v2765_v47 }
 0x1de   : > { %1925 = vmatprep.subr.bf16.mxu0 %v2750_v24  ;;  %1957 = vmatprep.subr.bf16.mxu1 %v2769_v48 }
 0x1e1   : > { %1927 = vmatpush1.bf16.msra.mxu0 %v2759_v36  ;;  %1959 = vmatpush1.bf16.msra.mxu1 %v2777_v61 }
 0x1e2   : > { %1929 = vmatprep.subr.bf16.mxu0 %v2762_v39  ;;  %1961 = vmatprep.subr.bf16.mxu1 %v2781_v63 }
 0x1e5   : > { %1931 = vmatpush1.bf16.msra.mxu0 %v2771_v52  ;;  %1963 = vmatpush1.bf16.msra.mxu1 %v2787_v9 }
 0x1e6   : > { %1933 = vmatprep.subr.bf16.mxu0 %v2774_v57  ;;  %1965 = vmatprep.subr.bf16.mxu1 %v2791_v10 }
 0x1e9   : > { %1935 = vmatpush1.bf16.msra.mxu0 %v2783_v2  ;;  %1967 = vmatpush1.bf16.msra.mxu1 %v2795_v15 }
 0x1ea   : > { %1969 = vmatprep.subr.bf16.mxu0 %v2696_v28  ;;  %2001 = vmatprep.subr.bf16.mxu1 %v2706_v44 }
 0x29f   : > { %v908_v19 = vpop.f32.mrb[2].mxu0  ;;  %v979_v20 = vpop.f32.mrb[6].mxu1 }
 0x2a0   : > { %v910_v22 = vpop.f32.mrb[3].mxu0  ;;  %v981_v23 = vpop.f32.mrb[7].mxu1 }
 0x2a1   : > { %v988_v26 = vcombine.low %v908_v19, %v910_v22  ;;  %v989_v27 = vcombine.low %v979_v20, %v981_v23  ;;  %v1421_v19 = vld [vmem:[#allocation12 + $0x40] sm:$0xff]  ;;  %v1422_v20 = vld [vmem:[#allocation12 + $0x48] sm:$0xff]  ;;  %v1423_v23 = vld [vmem:[#allocation12 + $0x50] sm:$0xff] }
 0x2a2   : > { %v2045_v22 = vpack.c.bf16 %v1422_v20, %v1421_v19 }
 0x2a3   : > { %v996_v29 = vrot.slane %v988_v26, %v2694_v25  ;;  %v1003_v31 = vrot.slane %v989_v27, %v2694_v25  ;;  %v1424_v26 = vld [vmem:[#allocation12 + $0x58] sm:$0xff] }
 0x2a4   : > { %v2048_v27 = vpack.c.bf16 %v1424_v26, %v1423_v23 }
 0x2a5   : > { %v1004_v34 = vcombine.low %v996_v29, %v1003_v31  ;;  %v1425_v29 = vld [vmem:[#allocation12 + $0x60] sm:$0xff]  ;;  %v1426_v31 = vld [vmem:[#allocation12 + $0x68] sm:$0xff] }
 0x2a7   : > { %v1006_v35 = vadd.f32 %v1004_v34, %v576_v6  ;;  %v2039_v6 = vpack.c.bf16 %v1418_v18, %v1417_v60  ;;  %v2051_v34 = vpack.c.bf16 %v1426_v31, %v1425_v29 }
 0x2a9   : > { %v1703_v37 = vmul.f32 -1.442695, %v1006_v35  ;;  %v1014_v44 = vrot.slane %v1006_v35, 6  ;;  %v1427_v35 = vld [vmem:[#allocation12 + $0x70] sm:$0xff] }
 0x2ab   : > { %2169 = vpow2.f32 %v1703_v37  ;;  %v1428_v37 = vld [vmem:[#allocation12 + $0x78] sm:$0xff] }
 0x2b5   : > { %v2170_v28 = vpop.eup %2169 }
 0x2b6   : > { %v1010_v38 = vadd.f32 1.0, %v2170_v28  ;;  %v2054_v28 = vpack.c.bf16 %v1428_v37, %v1427_v35 }
 0x2b8   : > { %2171 = vrcp.f32 %v1010_v38 }
 0x2b9   : > { %2173 = vtanh.f32 %v1014_v44 }
 0x2c2   : > { %v2172_v40 = vpop.eup %2171 }
 0x2c3   : > { %v1018_v41 = vrot.slane %v2172_v40, 2  ;;  %v2174_v43 = vpop.eup %2173  ;;  %v1024_v54 = vrot.slane %v2172_v40, 4 }
 0x2c4   : > { %v1021_v46 = vmul.f32 %v2174_v43, %v2172_v40 }
 0x2c5   : > { %v1020_v49 = vmul.f32 %v1018_v41, %v2863_v55  ;;  %v1420_v55 = vld [vmem:[#allocation12 + $0x38] sm:$0xff] }
 0x2c7   : > { %v1022_v51 = vadd.f32 %v1021_v46, %v1020_v49 }
 0x2c9   : > { %2175 = vtanh.f32 %v1022_v51 }
 0x2d3   : > { %v2176_v58 = vpop.eup %2175 }
 0x2d4   : > { %v1026_v14 = vmul.f32 %v2176_v58, %v1024_v54 }
 0x2d6   : > { %1028 = vst [vmem:[#allocation5 + $0x2] sm:$0x3] %v1026_v14  ;;  %1096 = vmatmul.mubr.f32.vlgmr.msra.gmra.mrb[4].mxu0 %v1026_v14  ;;  %1167 = vmatmul.mubr.f32.vlgmr.msra.gmra.mrb[8].mxu1 %v1026_v14 }
 0x2d7   : > { %1971 = vmatpush1.bf16.msra.mxu0 %v2698_v30  ;;  %2003 = vmatpush1.bf16.msra.mxu1 %v2715_v53 }
 0x2d8   : > { %1973 = vmatprep.subr.bf16.mxu0 %v2704_v42  ;;  %2005 = vmatprep.subr.bf16.mxu1 %v2719_v56 }
 0x2d9   : > { %1284 = vmatprep.mubr.f32.mxu0 %v2409_v7  ;;  %1355 = vmatprep.mubr.f32.mxu1 %v2409_v7 }
 0x2db   : > { %1975 = vmatpush1.bf16.msra.mxu0 %v2708_v45  ;;  %2007 = vmatpush1.bf16.msra.mxu1 %v2728_v3 }
 0x2dc   : > { %1977 = vmatprep.subr.bf16.mxu0 %v2711_v50  ;;  %2009 = vmatprep.subr.bf16.mxu1 %v2733_v4 }
 0x2dd   : > { %v1410_v1 = vld [vmem:[#allocation5 + $0x2] sm:$0x3] }
 0x2df   : > { %1979 = vmatpush1.bf16.msra.mxu0 %v2721_v59  ;;  %2011 = vmatpush1.bf16.msra.mxu1 %v2741_v16 }
 0x2e0   : > { %1981 = vmatprep.subr.bf16.mxu0 %v2724_v62  ;;  %2013 = vmatprep.subr.bf16.mxu1 %v2745_v17 }
 0x2e3   : > { %1983 = vmatpush1.bf16.msra.mxu0 %v2735_v8  ;;  %2015 = vmatpush1.bf16.msra.mxu1 %v2753_v32 }
 0x2e4   : > { %1985 = vmatprep.subr.bf16.mxu0 %v2738_v11  ;;  %2017 = vmatprep.subr.bf16.mxu1 %v2757_v33 }
 0x2e7   : > { %1987 = vmatpush1.bf16.msra.mxu0 %v2747_v21  ;;  %2019 = vmatpush1.bf16.msra.mxu1 %v2765_v47 }
 0x2e8   : > { %1989 = vmatprep.subr.bf16.mxu0 %v2750_v24  ;;  %2021 = vmatprep.subr.bf16.mxu1 %v2769_v48 }
 0x2eb   : > { %1991 = vmatpush1.bf16.msra.mxu0 %v2759_v36  ;;  %2023 = vmatpush1.bf16.msra.mxu1 %v2777_v61  ;;  %v1414_v61 = vld [vmem:[#allocation12 + $0x8] sm:$0xff] }
 0x2ec   : > { %1993 = vmatprep.subr.bf16.mxu0 %v2762_v39  ;;  %2025 = vmatprep.subr.bf16.mxu1 %v2781_v63 }
 0x2ef   : > { %1995 = vmatpush1.bf16.msra.mxu0 %v2771_v52  ;;  %2027 = vmatpush1.bf16.msra.mxu1 %v2787_v9  ;;  %v1415_v9 = vld [vmem:[#allocation12 + $0x10] sm:$0xff] }
 0x2f0   : > { %1997 = vmatprep.subr.bf16.mxu0 %v2774_v57  ;;  %2029 = vmatprep.subr.bf16.mxu1 %v2791_v10  ;;  %v1413_v57 = vld [vmem:[#allocation12] sm:$0xff]  ;;  %v1416_v10 = vld [vmem:[#allocation12 + $0x18] sm:$0xff] }
 0x2f1   : > { %v2033_v63 = vpack.c.bf16 %v1414_v61, %v1413_v57 }
 0x2f3   : > { %1999 = vmatpush1.bf16.msra.mxu0 %v2783_v2  ;;  %2031 = vmatpush1.bf16.msra.mxu1 %v2795_v15  ;;  %v2411_v2 = vmov 0.0|0.0   ;;  %v2036_v15 = vpack.c.bf16 %v1416_v10, %v1415_v9 }
 0x2f4   : > { %2032 = vmatprep.subr.bf16.mxu0 %v2411_v2 }
 0x3a9   : > { %v1097_v30 = vpop.f32.mrb[4].mxu0  ;;  %v1168_v42 = vpop.f32.mrb[8].mxu1 }
 0x3aa   : > { %v1099_v45 = vpop.f32.mrb[5].mxu0  ;;  %v1170_v50 = vpop.f32.mrb[9].mxu1 }
 0x3ab   : > { %v1177_v53 = vcombine.low %v1097_v30, %v1099_v45  ;;  %v1178_v56 = vcombine.low %v1168_v42, %v1170_v50 }
 0x3ad   : > { %v1185_v59 = vrot.slane %v1177_v53, %v2694_v25  ;;  %v1192_v62 = vrot.slane %v1178_v56, %v2694_v25 }
 0x3af   : > { %v1193_v3 = vcombine.low %v1185_v59, %v1192_v62 }
 0x3b1   : > { %v1195_v4 = vadd.f32 %v1193_v3, %v577_v12  ;;  %v1419_v12 = vld [vmem:[#allocation12 + $0x30] sm:$0xff] }
 0x3b2   : > { %v2042_v5 = vpack.c.bf16 %v1420_v55, %v1419_v12 }
 0x3b3   : > { %v1704_v8 = vmul.f32 -1.442695, %v1195_v4  ;;  %v1203_v17 = vrot.slane %v1195_v4, 6 }
 0x3b5   : > { %2177 = vpow2.f32 %v1704_v8 }
 0x3bf   : > { %v2178_v11 = vpop.eup %2177 }
 0x3c0   : > { %v1199_v16 = vadd.f32 1.0, %v2178_v11 }
 0x3c2   : > { %2179 = vrcp.f32 %v1199_v16 }
 0x3c3   : > { %2181 = vtanh.f32 %v1203_v17 }
 0x3cc   : > { %v2180_v21 = vpop.eup %2179 }
 0x3cd   : > { %v1207_v24 = vrot.slane %v2180_v21, 2  ;;  %v2182_v32 = vpop.eup %2181  ;;  %v1213_v47 = vrot.slane %v2180_v21, 4 }
 0x3ce   : > { %v1210_v33 = vmul.f32 %v2182_v32, %v2180_v21 }
 0x3cf   : > { %v1209_v36 = vmul.f32 %v1207_v24, %v1022_v51 }
 0x3d1   : > { %v2943_v39 = vadd.f32 %v1210_v33, %v1209_v36  ;;  %v1706_v33 = vld [vmem:[%s3025_s5] ss:$0 sm:$0xff] }
 0x3d3   : > { %2183 = vtanh.f32 %v2943_v39 }
 0x3dd   : > { %v2184_v48 = vpop.eup %2183 }
 0x3de   : > { %v1215_v52 = vmul.f32 %v2184_v48, %v1213_v47 }
 0x3e0   : > { %1217 = vst [vmem:[#allocation5 + $0x4] sm:$0x3] %v1215_v52  ;;  %1285 = vmatmul.mubr.f32.vlgmr.msra.gmra.mrb[6].mxu0 %v1215_v52  ;;  %1356 = vmatmul.mubr.f32.vlgmr.msra.gmra.mrb[10].mxu1 %v1215_v52 }
 0x3e1   : > { %2034 = vmatpush3.bf16.msra.mxu0 %v2033_v63  ;;  %1765 = vmatprep.mubr.msk.f32.mxu0 %vm2412_vm1, %v2409_v7 }
 0x3e2   : > { %2035 = vmatprep.subr.bf16.mxu0 %v2411_v2 }
 0x3e5   : > { %2037 = vmatpush3.bf16.msra.mxu0 %v2036_v15 }
 0x3e6   : > { %2038 = vmatprep.subr.bf16.mxu0 %v2411_v2 }
 0x3e7   : > { %v1411_v11 = vld [vmem:[#allocation5 + $0x4] sm:$0x3] }
 0x3e9   : > { %2040 = vmatpush3.bf16.msra.mxu0 %v2039_v6 }
 0x3ea   : > { %2041 = vmatprep.subr.bf16.mxu0 %v2411_v2 }
 0x3ed   : > { %2043 = vmatpush3.bf16.msra.mxu0 %v2042_v5 }
 0x3ee   : > { %2044 = vmatprep.subr.bf16.mxu0 %v2411_v2 }
 0x3f1   : > { %2046 = vmatpush3.bf16.msra.mxu0 %v2045_v22 }
 0x3f2   : > { %2047 = vmatprep.subr.bf16.mxu0 %v2411_v2 }
 0x3f5   : > { %2049 = vmatpush3.bf16.msra.mxu0 %v2048_v27 }
 0x3f6   : > { %2050 = vmatprep.subr.bf16.mxu0 %v2411_v2 }
 0x3f9   : > { %2052 = vmatpush3.bf16.msra.mxu0 %v2051_v34 }
 0x3fa   : > { %2053 = vmatprep.subr.bf16.mxu0 %v2411_v2 }
 0x3fd   : > { %2055 = vmatpush3.bf16.msra.mxu0 %v2054_v28 }
 0x4b3   : > { %v1286_v38 = vpop.f32.mrb[6].mxu0  ;;  %v1357_v44 = vpop.f32.mrb[10].mxu1 }
 0x4b4   : > { %v1288_v40 = vpop.f32.mrb[7].mxu0  ;;  %v1359_v41 = vpop.f32.mrb[11].mxu1 }
 0x4b5   : > { %v1366_v43 = vcombine.low %v1286_v38, %v1288_v40  ;;  %v1367_v46 = vcombine.low %v1357_v44, %v1359_v41 }
 0x4b7   : > { %v1374_v49 = vrot.slane %v1366_v43, %v2694_v25  ;;  %v1381_v51 = vrot.slane %v1367_v46, %v2694_v25 }
 0x4b9   : > { %v1382_v7 = vcombine.low %v1374_v49, %v1381_v51 }
 0x4bb   : > { %v1384_v54 = vadd.f32 %v1382_v7, %v578_v13  ;;  %v1409_v13 = vld [vmem:[#allocation5] sm:$0x3] }
 0x4bc   : > { %v1440_v8 = vcombine.low %v1409_v13, %v1410_v1 }
 0x4bd   : > { %v1705_v58 = vmul.f32 -1.442695, %v1384_v54  ;;  %v1392_v42 = vrot.slane %v1384_v54, 6 }
 0x4be   : > { %v1448_v21 = vrot.slane %v1440_v8, %v2694_v25 }
 0x4bf   : > { %2185 = vpow2.f32 %v1705_v58 }
 0x4c9   : > { %v2186_v14 = vpop.eup %2185 }
 0x4ca   : > { %v1388_v30 = vadd.f32 1.0, %v2186_v14 }
 0x4cc   : > { %2187 = vrcp.f32 %v1388_v30 }
 0x4cd   : > { %2189 = vtanh.f32 %v1392_v42 }
 0x4d6   : > { %v2188_v45 = vpop.eup %2187 }
 0x4d7   : > { %v1396_v50 = vrot.slane %v2188_v45, 2  ;;  %v2190_v53 = vpop.eup %2189  ;;  %v1402_v3 = vrot.slane %v2188_v45, 4 }
 0x4d8   : > { %v1399_v59 = vmul.f32 %v2190_v53, %v2188_v45 }
 0x4d9   : > { %v1398_v56 = vmul.f32 %v1396_v50, %v2943_v39 }
 0x4db   : > { %v1400_v62 = vadd.f32 %v1399_v59, %v1398_v56 }
 0x4dd   : > { %2191 = vtanh.f32 %v1400_v62  ;;  %1408 = vst [vmem:[#allocation3] sm:$0x3] %v1400_v62 }
 0x4e7   : > { %v2192_v4 = vpop.eup %2191 }
 0x4e8   : > { %v1404_v0 = vmul.f32 %v2192_v4, %v1402_v3 }
 0x4ea   : > { %1406 = vst [vmem:[#allocation5 + $0x6] sm:$0x3] %v1404_v0  ;;  %1407 = vst [vmem:[#allocation2] sm:$0x3] %v1404_v0 }
 0x4f1   : > { %v1412_v16 = vld [vmem:[#allocation5 + $0x6] sm:$0x3] }
 0x4f2   : > { %v1441_v17 = vcombine.low %v1411_v11, %v1412_v16 }
 0x4f4   : > { %v1455_v24 = vrot.slane %v1441_v17, %v2694_v25 }
 0x4f6   : > { %v1456_v32 = vcombine.low %v1448_v21, %v1455_v24 }
 0x4f8   : > { %1766 = vmatmul.mubr.f32.vlgmr.msra.gmra.mrb[8].mxu0 %v1456_v32 }
 0x5cb   : > { %v1524_v36 = vpop.f32.mrb[8].mxu0 }
 0x5cc   : > { %v1525_v39 = vadd.f32 %v1706_v33, %v1524_v36  ;;  %v1767_v47 = vpop.f32.mrb[9].mxu0 }
 0x5ce   : > { %v1529_v48 = vcombine.high %v1525_v39, %v1525_v39  ;;  %v1536_v52 = vrot.slane %v1525_v39, %v2694_v25  ;;  %1707 = vst.sshfl [vmem:[%s2682_s9] sm:$0x3 pattern:$0x76325410] %v1525_v39 }
 0x5d0   : > { %v1543_v57 = vrot.slane %v1529_v48, %v2694_v25  ;;  %v1544_v61 = vcombine.high %v1536_v52, %v1536_v52  ;;  %1708 = vst.sshfl [vmem:[%s2682_s9 + $0x4] sm:$0x3 pattern:$0x76325410] %v1529_v48 }
 0x5d2   : > { %v1545_v63 = vcombine.high %v1543_v57, %v1543_v57  ;;  %1551 = vst [vmem:[%s2682_s9 + $0x2] sm:$0x3] %v1544_v61 }
 0x5d4   : > { %1553 = vst [vmem:[%s2682_s9 + $0x6] sm:$0x3] %v1545_v63 }
 0x5d5   : > { %2320 = shalt.err (!%p2317_p4)
}
 0x5d6   : > { %s2321_s13 = scalar_lea.hbm %s2967_s11, 128  ;;  %s2325_s7 = scalar_lea.hbm %s3050_s15, 256 }
 0x5d7   : > { %p2322_p2 = scmp.ne.s32.totalorder %s2967_s11, %s2321_s13  ;;  %p2326_p1 = scmp.lt.u32.totalorder %s2967_s11, %s3050_s15 }
 0x5d8   : > { %p2327_p11 = scmp.lt.u32.totalorder %s2325_s7, %s2321_s13  ;;  %p2329_p6 = scmp.lt.u32.totalorder %s2321_s13, %s2967_s11 }
 0x5d9   : > { %p2323_p8 = pnand %p2322_p2, %p2604_p10 }
 0x5da   : > { %p2328_p13 = por %p2327_p11, %p2326_p1 }
 0x5db   : > { %p2324_p12 = pneg %p2323_p8 }
 0x5dc   : > { %p2330_p3 = por %p2329_p6, %p2328_p13 }
 0x5de   : > { %p2331_p5 = pnand %p2330_p3, %p2324_p12 }
 0x5e0   : > { %2334 = shalt.err (!%p2331_p5)
}
 0x5e1   : > { %s2414_s14 = smov 32   ;;  %s2415_s17 = smov 2  }
 0x5e2   : > { %2070 = dma.vmem_to_hbm [thread:$0]  (%p2604_p10), %s2969_s28, 128, %s2967_s11, %s1555_s21, %s2414_s14, %s2414_s14, %s2415_s17  }
 0x5e3 PF: > { %s3051_s12 = sld [smem:[#allocation19_spill]]  ;;  %s3052_s24 = sld [smem:[#allocation20_spill]] }
 0x5e4   : > { %p3054_p9 = scmp.ge.s32.totalorder %s2397_s26, 2 }
 0x5e9   : > { %s1584_s6 = sand.u32 1, %s3051_s12   ;;  %p3053_p7 = scmp.ne.s32.totalorder %s3052_s24, 0 }
 0x5ea   : > { %s1585_s16 = scalar_lea.sflag [#allocation8], %s1584_s6 }
 0x5eb   : > { %p2087_p0 = pnand %p3054_p9, %p3053_p7 }
 0x5ed   : > { %2372 = dma.done.wait (!%p2087_p0), %s1585_s16, 128  }
 0x5ee   : > { %2374 = vsyncadd (!%p2087_p0), %s1585_s16, 4294967168  ;;  %s24_s26 = sadd.s32 1, %s2397_s26   ;;  %s3055_s21 = smov %s2381_s22 }
 0x5ef   : > { %p21_p4 = scmp.ge.s32.totalorder %s24_s26, 4   ;;  %s3056_s22 = smov %s2385_s23 }
 0x5f0   : > { %s3057_s23 = smov %s2616_s10  ;;  %s3058_s24 = smov %s2393_s25 }
 0x5f1   : > { %s3059_s25 = smov %s3061_s8  ;;  %23 = sbr.rel (!%p21_p4) target bundleno = 10 (0xa), region = 111 }
 0x5f8   :  { %1590 = vsyncpa [#allocation7], 1 }
 0x5f9   :  { %1592 = vsyncpa [#allocation7 + $0x1], 1 }
 0x5fa   :  { %1593 = vsyncpa [#allocation10], 1 }
 0x5fb   :  { %1594 = vsyncpa [#allocation13], 1 }
 0x5fc   :  { %1595 = vsyncpa [#allocation8], 1 }
 0x5fd   :  { %1597 = vsyncpa [#allocation8 + $0x1], 1 }

</bundles_post_ra>
